<compile_context>
chip_gen: v7x
topology: tpu7x:2x2x1
jax: 0.10.0
libtpu: 0.0.40
codegen_flags: <defaults>
</compile_context>

<pallas_src>
import functools

import jax
import jax.numpy as jnp
from jax import lax
from jax.experimental import pallas as pl
from jax.experimental.pallas import tpu as pltpu

KH, KW = 3, 3  # spatial taps of the (1, 3, 3) kernel


def _conv_bn_relu_kernel(x_ref, w_ref, mask_ref, bias_ref, o_ref,
                         xe_ref, xs_ref, *, W):
    # x_ref    : (1, Cin, L)        L = Bd*H*W, flattened (d, h, w) on lanes
    # w_ref    : (Cout, 9*Cin)      conv taps, BN scale pre-folded
    # mask_ref : (9, L)             precomputed border masks (1.0 / 0.0), resident
    # bias_ref : (Cout, 1)          folded BN bias
    # o_ref    : (1, Cout, L)
    # xe_ref   : (Cin, L + 2*(W+1)) zero-bordered (halo) input scratch
    # xs_ref   : (9*Cin, L)         stacked matmul operand scratch
    cin = x_ref.shape[1]
    L = x_ref.shape[2]
    ext = W + 1
    dt = xe_ref.dtype

    # Fused (0,1,1) halo: zero the tiny borders (2*Cin*(W+1) elems; kept
    # per-step rather than pl.when(first-step) so megacore grid sharding can
    # never observe an uninitialized scratch) + contiguous interior copy.
    # TODO(synk): replace the interior copy with a direct HBM->halo DMA or
    # pltpu.roll-generated slabs (review item 2); it is ~10% of step traffic now.
    xe_ref[:, 0:ext] = jnp.zeros((cin, ext), dt)
    xe_ref[:, ext + L:ext + L + ext] = jnp.zeros((cin, ext), dt)
    xe_ref[:, ext:ext + L] = x_ref[0]

    # Build the stacked (9*Cin, L) operand: each tap is a contiguous shifted
    # slab of the halo'd input times its precomputed border mask.
    for kh in range(KH):
        for kw in range(KW):
            t = kh * KW + kw
            off = kh * W + kw
            xs = xe_ref[:, off:off + L]
            if not (kh == 1 and kw == 1):          # center tap needs no mask
                xs = xs * mask_ref[t:t + 1]        # (1, L) broadcast over Cin
            xs_ref[t * cin:(t + 1) * cin, :] = xs

    # One MXU matmul over K = 9*Cin (BN scale already folded into the weights),
    # then bias + ReLU epilogue.
    y = jnp.dot(w_ref[...], xs_ref[...], preferred_element_type=jnp.float32)
    o_ref[0] = jnp.maximum(y + bias_ref[...], 0.0).astype(o_ref.dtype)


def _make_tap_masks(H, W, Bd, dtype):
    """(9, Bd*H*W) masks: tap (kh,kw) contributes only where its source row/col
    stays inside the HxW plane (also kills cross-depth-slice flat-shift leakage
    and anything the zero halo of the scratch would otherwise not cover)."""
    pos = jnp.arange(H * W, dtype=jnp.int32)
    row = pos // W
    col = pos % W
    planes = []
    for kh in range(KH):
        for kw in range(KW):
            m = jnp.ones((H * W,), jnp.bool_)
            if kh == 0:
                m = m & (row != 0)
            elif kh == KH - 1:
                m = m & (row != H - 1)
            if kw == 0:
                m = m & (col != 0)
            elif kw == KW - 1:
                m = m & (col != W - 1)
            planes.append(m)
    plane = jnp.stack(planes, 0).astype(dtype)        # (9, H*W)
    return jnp.tile(plane, (1, Bd))                   # (9, Bd*H*W)


def _vmem_plan():
    """Per-generation VMEM sizing: ~64 MiB limit on v5e/v6e (128 MiB physical),
    ~48 MiB on v7x (64 MiB physical); tile-picking budget is 70% of the limit."""
    try:
        cap = int(pltpu.get_tpu_info().vmem_capacity_bytes)
    except Exception:
        cap = 64 << 20          # conservative fallback (v7x per-core VMEM)
    limit = min(cap * 3 // 4, 64 << 20)
    budget = int(limit * 0.7)
    return limit, budget


def _pick_depth_tile(N, D, H, W, cin, cout, *, in_bytes, vmem_budget_bytes):
    """Depth slices (Bd) per grid step.

    Bd must divide D and keep the lane axis (Bd*H*W) a multiple of 128 unless
    Bd == D.  Picks the largest tile whose (dtype-aware) working set fits the
    budget, then ensures the total grid has >= 2 steps when a split exists so
    dual-TC chips (v7x) / megacore get both cores busy.
    """
    hw = H * W
    # Per-depth-slice working set: 2x input block, 2x output block, 2x masks,
    # halo scratch, stacked operand scratch, live f32 intermediates.
    per_d = hw * (in_bytes * (13 * cin + 2 * KH * KW) + 4 * 3 * cout)
    per_d = int(per_d * 1.2) + 1
    cands = [bd for bd in range(D, 0, -1)
             if D % bd == 0 and (bd == D or (bd * hw) % 128 == 0)]
    fitting = [bd for bd in cands if bd * per_d <= vmem_budget_bytes]
    pool = fitting if fitting else cands[-1:]
    best = pool[0]
    if N * (D // best) < 2:
        multi = [bd for bd in pool if N * (D // bd) >= 2]
        if multi:
            best = multi[0]
    # TODO(synk): add H/W-plane tiling for planes too large for one depth slice.
    return best


def conv_keep_all_forward(x, weight, gamma, beta, run_mean, run_var,
                          eps=1e-5, resnet=False, compute_dtype=None):
    """x: (N, Cin, D, H, W) f32; weight: (Cout, Cin, 1, 3, 3) (PyTorch layout).

    compute_dtype: optionally jnp.bfloat16 for the matmul operands + masks
    (halves input-side traffic on v6e/v7x; accumulation stays f32; on v5e the
    VPU has no native bf16 so prefer f32 there). Default: full f32 so the
    self-test keeps a strict tolerance against the unfused reference.
    """
    N, Cin, D, H, W = x.shape
    Cout = weight.shape[0]
    HW = H * W

    op_dtype = jnp.dtype(compute_dtype) if compute_dtype is not None else jnp.dtype(x.dtype)
    in_bytes = op_dtype.itemsize

    vmem_limit, vmem_budget = _vmem_plan()
    Bd = _pick_depth_tile(N, D, H, W, Cin, Cout,
                          in_bytes=in_bytes, vmem_budget_bytes=vmem_budget)
    L = Bd * HW
    grid = (N, D // Bd)

    # TODO(synk): PyTorch's freshly-built module is in train mode (batch-stat BN);
    # we implement the standard eval-mode BN (running stats) folded into the
    # conv weights (scale) and a per-channel bias.
    inv_std = gamma / jnp.sqrt(run_var + eps)
    bias = (beta - run_mean * inv_std).reshape(Cout, 1).astype(jnp.float32)

    w_taps = jnp.transpose(weight[:, :, 0, :, :], (0, 2, 3, 1))      # (Cout,3,3,Cin)
    w_folded = (w_taps.reshape(Cout, KH * KW * Cin) *
                inv_std.reshape(Cout, 1)).astype(op_dtype)           # (Cout, 9*Cin)

    # Free reshape only — no pad / transpose HBM round trips in the wrapper.
    x_flat = x.reshape(N, Cin, D * HW).astype(op_dtype)
    masks = _make_tap_masks(H, W, Bd, op_dtype)                      # (9, L)

    kernel = functools.partial(_conv_bn_relu_kernel, W=W)

    out_flat = pl.pallas_call(
        kernel,
        out_shape=jax.ShapeDtypeStruct((N, Cout, D * HW), jnp.float32),
        grid_spec=pltpu.PrefetchScalarGridSpec(
            num_scalar_prefetch=0,
            grid=grid,
            in_specs=[
                pl.BlockSpec((1, Cin, L), lambda n, db: (n, 0, db)),
                pl.BlockSpec((Cout, KH * KW * Cin), lambda n, db: (0, 0)),
                pl.BlockSpec((KH * KW, L), lambda n, db: (0, 0)),
                pl.BlockSpec((Cout, 1), lambda n, db: (0, 0)),
            ],
            out_specs=pl.BlockSpec((1, Cout, L), lambda n, db: (n, 0, db)),
            scratch_shapes=[
                pltpu.VMEM((Cin, L + 2 * (W + 1)), op_dtype),   # halo'd input
                pltpu.VMEM((KH * KW * Cin, L), op_dtype),       # stacked operand
            ],
        ),
        compiler_params=pltpu.CompilerParams(
            dimension_semantics=("parallel", "parallel"),
            vmem_limit_bytes=vmem_limit),
    )(x_flat, w_folded, masks, bias)

    out = out_flat.reshape(N, Cout, D, H, W)
    if resnet:
        # Matches the PyTorch module: out = x + conv_block(x); requires Cin == Cout.
        assert Cin == Cout, "resnet path requires indepth == outdepth"
        out = x + out
    return out


def reference_forward(x, weight, gamma, beta, run_mean, run_var, eps=1e-5):
    """Pure-JAX reference (same eval-mode BN semantics, unfused)."""
    y = lax.conv_general_dilated(
        x, weight, window_strides=(1, 1, 1),
        padding=((0, 0), (1, 1), (1, 1)),
        dimension_numbers=("NCDHW", "OIDHW", "NCDHW"))
    inv_std = gamma / jnp.sqrt(run_var + eps)
    scale = inv_std.reshape(1, -1, 1, 1, 1)
    bias = (beta - run_mean * inv_std).reshape(1, -1, 1, 1, 1)
    return jnp.maximum(y * scale + bias, 0.0)


if __name__ == "__main__":
    key = jax.random.PRNGKey(0)
    N, Cin, Cout, D, H, W = 2, 4, 8, 3, 16, 16
    kx, kw_, kg, kb = jax.random.split(key, 4)

    x = jax.random.normal(kx, (N, Cin, D, H, W), jnp.float32)

    # Deterministic parameter init (Conv3d weight shape: (Cout, Cin, 1, 3, 3)).
    fan_in = Cin * 1 * KH * KW
    bound = 1.0 / (fan_in ** 0.5)
    weight = jax.random.uniform(kw_, (Cout, Cin, 1, KH, KW), jnp.float32,
                                -bound, bound)
    gamma = 1.0 + 0.1 * jax.random.normal(kg, (Cout,), jnp.float32)
    beta = 0.1 * jax.random.normal(kb, (Cout,), jnp.float32)
    run_mean = jnp.zeros((Cout,), jnp.float32)
    run_var = jnp.ones((Cout,), jnp.float32)

    out = conv_keep_all_forward(x, weight, gamma, beta, run_mean, run_var)
    out = jax.block_until_ready(out)

    ref = reference_forward(x, weight, gamma, beta, run_mean, run_var)
    assert out.shape == (N, Cout, D, H, W), out.shape
    err = float(jnp.max(jnp.abs(out - ref)))
    assert jnp.allclose(out, ref, atol=5e-5, rtol=5e-5), err

    print("KERNEL_OK")
</pallas_src>

<mosaic_0001>
module attributes {stable_mosaic.version = 11 : i64} {
  func.func @_conv_bn_relu_kernel(%arg0: i32, %arg1: i32, %arg2: memref<1x4x768xf32, #tpu.memory_space<vmem>>, %arg3: memref<8x36xf32, #tpu.memory_space<vmem>>, %arg4: memref<9x768xf32, #tpu.memory_space<vmem>>, %arg5: memref<8x1xf32, #tpu.memory_space<vmem>>, %arg6: memref<1x8x768xf32, #tpu.memory_space<vmem>>, %arg7: memref<4x802xf32, #tpu.memory_space<vmem>>, %arg8: memref<36x768xf32, #tpu.memory_space<vmem>>) attributes {dimension_semantics = [#tpu.dimension_semantics<parallel>, #tpu.dimension_semantics<parallel>], iteration_bounds = array<i64: 2, 1>, scalar_prefetch = 0 : i64, scratch_operands = 2 : i64, tpu.core_type = #tpu.core_type<tc>, window_params = [{transform_indices = @transform_0, window_bounds = array<i64: 1, 4, 768>}, {pipeline_mode = #tpu.pipeline_mode<synchronous>, transform_indices = @transform_1, window_bounds = array<i64: 8, 36>}, {pipeline_mode = #tpu.pipeline_mode<synchronous>, transform_indices = @transform_2, window_bounds = array<i64: 9, 768>}, {pipeline_mode = #tpu.pipeline_mode<synchronous>, transform_indices = @transform_3, window_bounds = array<i64: 8, 1>}, {transform_indices = @transform_4, window_bounds = array<i64: 1, 8, 768>}]} {
    %cst = arith.constant 0.000000e+00 : f32
    %0 = vector.broadcast %cst : f32 to vector<4x17xf32>
    %c0 = arith.constant 0 : index
    %c0_0 = arith.constant 0 : index
    %1 = vector.load %arg7[%c0, %c0_0] : memref<4x802xf32, #tpu.memory_space<vmem>>, vector<4x17xf32>
    tpu.vector_store %arg7[%c0, %c0_0], %0 {strides = array<i32>} : memref<4x802xf32, #tpu.memory_space<vmem>>, vector<4x17xf32>,
    %cst_1 = arith.constant 0.000000e+00 : f32
    %2 = vector.broadcast %cst_1 : f32 to vector<4x17xf32>
    %c0_2 = arith.constant 0 : index
    %c785 = arith.constant 785 : index
    %3 = vector.load %arg7[%c0_2, %c785] : memref<4x802xf32, #tpu.memory_space<vmem>>, vector<4x17xf32>
    tpu.vector_store %arg7[%c0_2, %c785], %2 {strides = array<i32>} : memref<4x802xf32, #tpu.memory_space<vmem>>, vector<4x17xf32>,
    %c0_3 = arith.constant 0 : index
    %c0_4 = arith.constant 0 : index
    %c0_5 = arith.constant 0 : index
    %4 = vector.load %arg2[%c0_3, %c0_4, %c0_5] : memref<1x4x768xf32, #tpu.memory_space<vmem>>, vector<1x4x768xf32>
    %5 = vector.shape_cast %4 : vector<1x4x768xf32> to vector<4x768xf32>
    %c0_6 = arith.constant 0 : index
    %c17 = arith.constant 17 : index
    %6 = vector.load %arg7[%c0_6, %c17] : memref<4x802xf32, #tpu.memory_space<vmem>>, vector<4x768xf32>
    tpu.vector_store %arg7[%c0_6, %c17], %5 {strides = array<i32>} : memref<4x802xf32, #tpu.memory_space<vmem>>, vector<4x768xf32>,
    %c0_7 = arith.constant 0 : index
    %c0_8 = arith.constant 0 : index
    %7 = vector.load %arg7[%c0_7, %c0_8] : memref<4x802xf32, #tpu.memory_space<vmem>>, vector<4x768xf32>
    %c0_9 = arith.constant 0 : index
    %c0_10 = arith.constant 0 : index
    %8 = vector.load %arg4[%c0_9, %c0_10] : memref<9x768xf32, #tpu.memory_space<vmem>>, vector<1x768xf32>
    %9 = vector.broadcast %8 : vector<1x768xf32> to vector<4x768xf32>
    %10 = arith.mulf %7, %9 : vector<4x768xf32>
    %c0_11 = arith.constant 0 : index
    %c0_12 = arith.constant 0 : index
    %11 = vector.load %arg8[%c0_11, %c0_12] : memref<36x768xf32, #tpu.memory_space<vmem>>, vector<4x768xf32>
    tpu.vector_store %arg8[%c0_11, %c0_12], %10 {strides = array<i32>} : memref<36x768xf32, #tpu.memory_space<vmem>>, vector<4x768xf32>,
    %c0_13 = arith.constant 0 : index
    %c1 = arith.constant 1 : index
    %12 = vector.load %arg7[%c0_13, %c1] : memref<4x802xf32, #tpu.memory_space<vmem>>, vector<4x768xf32>
    %c1_14 = arith.constant 1 : index
    %c0_15 = arith.constant 0 : index
    %13 = vector.load %arg4[%c1_14, %c0_15] : memref<9x768xf32, #tpu.memory_space<vmem>>, vector<1x768xf32>
    %14 = vector.broadcast %13 : vector<1x768xf32> to vector<4x768xf32>
    %15 = arith.mulf %12, %14 : vector<4x768xf32>
    %c4 = arith.constant 4 : index
    %c0_16 = arith.constant 0 : index
    %16 = vector.load %arg8[%c4, %c0_16] : memref<36x768xf32, #tpu.memory_space<vmem>>, vector<4x768xf32>
    tpu.vector_store %arg8[%c4, %c0_16], %15 {strides = array<i32>} : memref<36x768xf32, #tpu.memory_space<vmem>>, vector<4x768xf32>,
    %c0_17 = arith.constant 0 : index
    %c2 = arith.constant 2 : index
    %17 = vector.load %arg7[%c0_17, %c2] : memref<4x802xf32, #tpu.memory_space<vmem>>, vector<4x768xf32>
    %c2_18 = arith.constant 2 : index
    %c0_19 = arith.constant 0 : index
    %18 = vector.load %arg4[%c2_18, %c0_19] : memref<9x768xf32, #tpu.memory_space<vmem>>, vector<1x768xf32>
    %19 = vector.broadcast %18 : vector<1x768xf32> to vector<4x768xf32>
    %20 = arith.mulf %17, %19 : vector<4x768xf32>
    %c8 = arith.constant 8 : index
    %c0_20 = arith.constant 0 : index
    %21 = vector.load %arg8[%c8, %c0_20] : memref<36x768xf32, #tpu.memory_space<vmem>>, vector<4x768xf32>
    tpu.vector_store %arg8[%c8, %c0_20], %20 {strides = array<i32>} : memref<36x768xf32, #tpu.memory_space<vmem>>, vector<4x768xf32>,
    %c0_21 = arith.constant 0 : index
    %c16 = arith.constant 16 : index
    %22 = vector.load %arg7[%c0_21, %c16] : memref<4x802xf32, #tpu.memory_space<vmem>>, vector<4x768xf32>
    %c3 = arith.constant 3 : index
    %c0_22 = arith.constant 0 : index
    %23 = vector.load %arg4[%c3, %c0_22] : memref<9x768xf32, #tpu.memory_space<vmem>>, vector<1x768xf32>
    %24 = vector.broadcast %23 : vector<1x768xf32> to vector<4x768xf32>
    %25 = arith.mulf %22, %24 : vector<4x768xf32>
    %c12 = arith.constant 12 : index
    %c0_23 = arith.constant 0 : index
    %26 = vector.load %arg8[%c12, %c0_23] : memref<36x768xf32, #tpu.memory_space<vmem>>, vector<4x768xf32>
    tpu.vector_store %arg8[%c12, %c0_23], %25 {strides = array<i32>} : memref<36x768xf32, #tpu.memory_space<vmem>>, vector<4x768xf32>,
    %c0_24 = arith.constant 0 : index
    %c17_25 = arith.constant 17 : index
    %27 = vector.load %arg7[%c0_24, %c17_25] : memref<4x802xf32, #tpu.memory_space<vmem>>, vector<4x768xf32>
    %c16_26 = arith.constant 16 : index
    %c0_27 = arith.constant 0 : index
    %28 = vector.load %arg8[%c16_26, %c0_27] : memref<36x768xf32, #tpu.memory_space<vmem>>, vector<4x768xf32>
    tpu.vector_store %arg8[%c16_26, %c0_27], %27 {strides = array<i32>} : memref<36x768xf32, #tpu.memory_space<vmem>>, vector<4x768xf32>,
    %c0_28 = arith.constant 0 : index
    %c18 = arith.constant 18 : index
    %29 = vector.load %arg7[%c0_28, %c18] : memref<4x802xf32, #tpu.memory_space<vmem>>, vector<4x768xf32>
    %c5 = arith.constant 5 : index
    %c0_29 = arith.constant 0 : index
    %30 = vector.load %arg4[%c5, %c0_29] : memref<9x768xf32, #tpu.memory_space<vmem>>, vector<1x768xf32>
    %31 = vector.broadcast %30 : vector<1x768xf32> to vector<4x768xf32>
    %32 = arith.mulf %29, %31 : vector<4x768xf32>
    %c20 = arith.constant 20 : index
    %c0_30 = arith.constant 0 : index
    %33 = vector.load %arg8[%c20, %c0_30] : memref<36x768xf32, #tpu.memory_space<vmem>>, vector<4x768xf32>
    tpu.vector_store %arg8[%c20, %c0_30], %32 {strides = array<i32>} : memref<36x768xf32, #tpu.memory_space<vmem>>, vector<4x768xf32>,
    %c0_31 = arith.constant 0 : index
    %c32 = arith.constant 32 : index
    %34 = vector.load %arg7[%c0_31, %c32] : memref<4x802xf32, #tpu.memory_space<vmem>>, vector<4x768xf32>
    %c6 = arith.constant 6 : index
    %c0_32 = arith.constant 0 : index
    %35 = vector.load %arg4[%c6, %c0_32] : memref<9x768xf32, #tpu.memory_space<vmem>>, vector<1x768xf32>
    %36 = vector.broadcast %35 : vector<1x768xf32> to vector<4x768xf32>
    %37 = arith.mulf %34, %36 : vector<4x768xf32>
    %c24 = arith.constant 24 : index
    %c0_33 = arith.constant 0 : index
    %38 = vector.load %arg8[%c24, %c0_33] : memref<36x768xf32, #tpu.memory_space<vmem>>, vector<4x768xf32>
    tpu.vector_store %arg8[%c24, %c0_33], %37 {strides = array<i32>} : memref<36x768xf32, #tpu.memory_space<vmem>>, vector<4x768xf32>,
    %c0_34 = arith.constant 0 : index
    %c33 = arith.constant 33 : index
    %39 = vector.load %arg7[%c0_34, %c33] : memref<4x802xf32, #tpu.memory_space<vmem>>, vector<4x768xf32>
    %c7 = arith.constant 7 : index
    %c0_35 = arith.constant 0 : index
    %40 = vector.load %arg4[%c7, %c0_35] : memref<9x768xf32, #tpu.memory_space<vmem>>, vector<1x768xf32>
    %41 = vector.broadcast %40 : vector<1x768xf32> to vector<4x768xf32>
    %42 = arith.mulf %39, %41 : vector<4x768xf32>
    %c28 = arith.constant 28 : index
    %c0_36 = arith.constant 0 : index
    %43 = vector.load %arg8[%c28, %c0_36] : memref<36x768xf32, #tpu.memory_space<vmem>>, vector<4x768xf32>
    tpu.vector_store %arg8[%c28, %c0_36], %42 {strides = array<i32>} : memref<36x768xf32, #tpu.memory_space<vmem>>, vector<4x768xf32>,
    %c0_37 = arith.constant 0 : index
    %c34 = arith.constant 34 : index
    %44 = vector.load %arg7[%c0_37, %c34] : memref<4x802xf32, #tpu.memory_space<vmem>>, vector<4x768xf32>
    %c8_38 = arith.constant 8 : index
    %c0_39 = arith.constant 0 : index
    %45 = vector.load %arg4[%c8_38, %c0_39] : memref<9x768xf32, #tpu.memory_space<vmem>>, vector<1x768xf32>
    %46 = vector.broadcast %45 : vector<1x768xf32> to vector<4x768xf32>
    %47 = arith.mulf %44, %46 : vector<4x768xf32>
    %c32_40 = arith.constant 32 : index
    %c0_41 = arith.constant 0 : index
    %48 = vector.load %arg8[%c32_40, %c0_41] : memref<36x768xf32, #tpu.memory_space<vmem>>, vector<4x768xf32>
    tpu.vector_store %arg8[%c32_40, %c0_41], %47 {strides = array<i32>} : memref<36x768xf32, #tpu.memory_space<vmem>>, vector<4x768xf32>,
    %c0_42 = arith.constant 0 : index
    %c0_43 = arith.constant 0 : index
    %49 = vector.load %arg3[%c0_42, %c0_43] : memref<8x36xf32, #tpu.memory_space<vmem>>, vector<8x36xf32>
    %c0_44 = arith.constant 0 : index
    %c0_45 = arith.constant 0 : index
    %50 = vector.load %arg8[%c0_44, %c0_45] : memref<36x768xf32, #tpu.memory_space<vmem>>, vector<36x768xf32>
    %cst_46 = arith.constant dense<0.000000e+00> : vector<8x768xf32>
    %51 = tpu.matmul %49, %50, %cst_46 {dimension_numbers = #tpu.dot_dimension_numbers<[1], [0], [0], [1], [0, 0, 1, 1], [], []>} : vector<8x36xf32>, vector<36x768xf32>, vector<8x768xf32> -> vector<8x768xf32>
    %c0_47 = arith.constant 0 : index
    %c0_48 = arith.constant 0 : index
    %52 = vector.load %arg5[%c0_47, %c0_48] : memref<8x1xf32, #tpu.memory_space<vmem>>, vector<8x1xf32>
    %53 = vector.broadcast %52 : vector<8x1xf32> to vector<8x768xf32>
    %54 = arith.addf %51, %53 : vector<8x768xf32>
    %cst_49 = arith.constant 0.000000e+00 : f32
    %55 = vector.broadcast %cst_49 : f32 to vector<8x768xf32>
    %56 = arith.maximumf %54, %55 : vector<8x768xf32>
    %c0_50 = arith.constant 0 : index
    %c0_51 = arith.constant 0 : index
    %c0_52 = arith.constant 0 : index
    %57 = vector.load %arg6[%c0_50, %c0_51, %c0_52] : memref<1x8x768xf32, #tpu.memory_space<vmem>>, vector<1x8x768xf32>
    %58 = vector.shape_cast %57 : vector<1x8x768xf32> to vector<8x768xf32>
    %59 = vector.shape_cast %56 : vector<8x768xf32> to vector<1x8x768xf32>
    tpu.vector_store %arg6[%c0_50, %c0_51, %c0_52], %59 {strides = array<i32>} : memref<1x8x768xf32, #tpu.memory_space<vmem>>, vector<1x8x768xf32>,
    return
  }
  func.func @transform_0(%arg0: i32, %arg1: i32) -> (i32, i32, i32) {
    %c0_i32 = arith.constant 0 : i32
    %c0_i32_0 = arith.constant 0 : i32
    return %arg0, %c0_i32, %arg1 : i32, i32, i32
  }
  func.func @transform_1(%arg0: i32, %arg1: i32) -> (i32, i32) {
    %c0_i32 = arith.constant 0 : i32
    %c0_i32_0 = arith.constant 0 : i32
    %c0_i32_1 = arith.constant 0 : i32
    return %c0_i32, %c0_i32_0 : i32, i32
  }
  func.func @transform_2(%arg0: i32, %arg1: i32) -> (i32, i32) {
    %c0_i32 = arith.constant 0 : i32
    %c0_i32_0 = arith.constant 0 : i32
    %c0_i32_1 = arith.constant 0 : i32
    return %c0_i32, %c0_i32_0 : i32, i32
  }
  func.func @transform_3(%arg0: i32, %arg1: i32) -> (i32, i32) {
    %c0_i32 = arith.constant 0 : i32
    %c0_i32_0 = arith.constant 0 : i32
    %c0_i32_1 = arith.constant 0 : i32
    return %c0_i32, %c0_i32_0 : i32, i32
  }
  func.func @transform_4(%arg0: i32, %arg1: i32) -> (i32, i32, i32) {
    %c0_i32 = arith.constant 0 : i32
    %c0_i32_0 = arith.constant 0 : i32
    return %arg0, %c0_i32, %arg1 : i32, i32, i32
  }
}

</mosaic_0001>

<bundles_post_ra>
// kernel: tpu_custom_call.1
= control target key start
LH: loop header
LB: loop body
LE: loop exit
PB: predicated region body
PF: predicated region fallthrough
CT: control target
= control target key end

     0   :  { %9 = vsyncpa [#allocation5], 0  ;;  %s2605_s0 = inlined_call_operand.hbm [shape: f32[2,4,768], index: 0, kind: input, shape index: {}]   ;;  %s2606_s1 = inlined_call_operand.vmem [shape: f32[8,36], index: 1, kind: input, shape index: {}]   ;;  %s2607_s2 = inlined_call_operand.hbm [shape: f32[9,768], index: 2, kind: input, shape index: {}]   ;;  %s2608_s3 = inlined_call_operand.vmem [shape: f32[8,1], index: 3, kind: input, shape index: {}]   ;;  %s2609_s4 = inlined_call_operand.hbm [shape: f32[2,8,768], index: 4, kind: output, shape index: {}]  }
   0x1   :  { %11 = vsyncpa [#allocation5 + $0x1], 0 }
   0x2   :  { %12 = vsyncpa [#allocation8], 0 }
   0x3   :  { %13 = vsyncpa [#allocation6], 0 }
   0x4   :  { %15 = vsyncpa [#allocation6 + $0x1], 0  ;;  %s1815_s15 = smov 0   ;;  %s1817_s16 = smov 0  }
   0x5   :  { %s1819_s17 = smov 0   ;;  %s1821_s18 = smov 0  }
   0x6   :  { %s1823_s19 = smov 0   ;;  %s1825_s20 = smov 0  }
   0x7 LB: > { %s1477_s21 = sadd.s32 4294967295, %s1765_s20   ;;  %s1478_s22 = sadd.s32 4294967294, %s1765_s20   ;;  %s1765_s20 = sphi %s1825_s20, %s21_s20   ;;  %s1761_s19 = sphi %s1823_s19, %s2632_s19   ;;  %s1757_s18 = sphi %s1821_s18, %s2631_s18   ;;  %s1753_s17 = sphi %s1819_s17, %s2630_s17   ;;  %s1749_s16 = sphi %s1817_s16, %s2629_s16   ;;  %s1745_s15 = sphi %s1815_s15, %s2628_s15  }
   0x8   : > { %p55_p0 = scmp.ne.s32.totalorder %s1749_s16, %s1745_s15  ;;  %p1849_p1 = scmp.eq.s32.totalorder %s1477_s21, 0 }
   0x9   : > { %p1853_p2 = scmp.eq.s32.totalorder %s1477_s21, 1  ;;  %p150_p3 = scmp.eq.s32.totalorder %s1478_s22, 1 }
   0xa   : > { %s2614_s23 = scalar_select %p1849_p1, 1, 0 }
   0xb   : > { %s2615_s24 = scalar_select %p1853_p2, 1, 0 }
   0xc   : > { %p1859_p4 = por %p1849_p1, %p55_p0  ;;  %p1479_p5 = scmp.ge.s32.totalorder %s1765_s20, 1 }
   0xd   : > { %p1864_p6 = por %p150_p3, %p55_p0  ;;  %p157_p7 = scmp.lt.s32.totalorder %s1765_s20, 3 }
   0xe   : > { %s2616_s25 = scalar_select %p1859_p4, 1, 0 }
   0xf   : > { %s2617_s26 = scalar_select %p1864_p6, 1, 0 }
  0x10   : > { %p1869_p8 = pnand %p1479_p5, %p157_p7  ;;  %s1767_s28 = smov [#allocation7]  }
  0x11   : > { %s172_s29 = sshll.u32 %s1767_s28, 4  ;;  %s33_s5 = sadd.s32 1, %s1761_s19  ;;  %s173_s29 = int_to_ptr.vmem [resolvable:$true] %s172_s29 }
  0x12   : > { %s2618_s27 = scalar_select %p1869_p8, 1, 0 }
  0x13   : > { %p1534_p9 = pneg %p1869_p8  ;;  %s1621_s8 = scalar_lea.hbm %s2607_s2, 1536 }
  0x14   : > { %p1622_p12 = scmp.ne.s32.totalorder %s2607_s2, %s1621_s8  ;;  %p1628_p5 = scmp.lt.u32.totalorder %s1621_s8, %s2607_s2 }
  0x15   : > { %p1878_p11 = pnand %p1534_p9, %p1849_p1 }
  0x17   : > { %p1623_p13 = pneg %p1878_p11 }
  0x19   : > { %p1624_p0 = pnand %p1623_p13, %p1622_p12 }
  0x1b   : > { %p1625_p3 = pneg %p1624_p0 }
  0x1d   : > { %p1630_p7 = pnand %p1628_p5, %p1625_p3 }
  0x1f   : > { %1633 = shalt.err (!%p1630_p7)
}
  0x20   : > { %s1634_s13 = scalar_lea.vmem %s173_s29, 1536  ;;  %p1642_p1 = scmp.lt.s32.totalorder %s173_s29, %s173_s29 }
  0x21   : > { %p1635_p9 = scmp.ne.s32.totalorder %s173_s29, %s1634_s13  ;;  %p1643_p4 = scmp.lt.s32.totalorder %s1634_s13, %s1634_s13 }
  0x23   : > { %p1637_p10 = pnand %p1635_p9, %p1623_p13  ;;  %p1644_p8 = por %p1643_p4, %p1642_p1 }
  0x25   : > { %p1638_p6 = pneg %p1637_p10 }
  0x27   : > { %p1645_p2 = pnand %p1644_p8, %p1638_p6 }
  0x29   : > { %1648 = shalt.err (!%p1645_p2)
}
  0x2a   : > { %s1768_s14 = smov 768   ;;  %s1769_s21 = smov 48  }
  0x2b   : > { %1537 = dma.hbm_to_vmem [thread:$0]  (!%p1878_p11), %s2607_s2, 1536, %s173_s29, [#allocation8], %s1768_s14, %s1768_s14, %s1769_s21  }
  0x2c   : > { %p35_p1 = scmp.ge.s32.totalorder %s33_s5, 2  ;;  %s42_s6 = sadd.s32 1, %s1753_s17 }
  0x2d   : > { %p49_p2 = scmp.ne.s32.totalorder %s1753_s17, %s1749_s16  ;;  %p50_p4 = scmp.eq.s32.totalorder %s1765_s20, 0 }
  0x2e   : > { %s2634_s5 = smov (%p35_p1, %s33_s5), 0  ;;  %p2620_p8 = scmp.ne.s32.totalorder %s2615_s24, 0 }
  0x2f   : > { %p51_p6 = por %p50_p4, %p49_p2  ;;  %s37_s8 = ssub.s32 %s1761_s19, %s2634_s5 }
  0x30   : > { %p1907_p10 = por %p2620_p8, %p49_p2  ;;  %p1547_p12 = scmp.lt.s32.totalorder %s1765_s20, 2 }
  0x31   : > { %p40_p13 = scmp.eq.s32.totalorder %s37_s8, 0  ;;  %s189_s30 = sand.u32 1, %s1753_s17  }
  0x32   : > { %s1521_s9 = smul.u32 24, %s189_s30  ;;  %p1919_p11 = pnand %p1547_p12, %p51_p6 }
  0x33   : > { %s1916_s10 = scalar_select %p40_p13, %s1753_s17, %s42_s6  }
  0x34   : > { %s1522_s29 = smul.u32 384, %s1761_s19  ;;  %s193_s11 = scalar_lea.vmem [#allocation4], %s1521_s9 }
  0x35   : > { %s203_s12 = sshll.u32 %s193_s11, 4  ;;  %s190_s22 = scalar_lea.sflag [#allocation5], %s189_s30  ;;  %s1928_s12 = int_to_ptr.vmem [resolvable:$true] %s203_s12 }
  0x36   : > { %s1926_s21 = scalar_lea.hbm %s2605_s0, %s1522_s29  ;;  %p1651_p3 = pneg %p1919_p11 }
  0x37   : > { %s1649_s28 = scalar_lea.hbm %s1926_s21, 384  ;;  %s1654_s9 = scalar_lea.hbm %s2605_s0, 768 }
  0x38   : > { %p1650_p0 = scmp.ne.s32.totalorder %s1926_s21, %s1649_s28  ;;  %p1655_p9 = scmp.lt.u32.totalorder %s1926_s21, %s2605_s0 }
  0x39   : > { %p1656_p1 = scmp.lt.u32.totalorder %s1654_s9, %s1649_s28  ;;  %p1658_p4 = scmp.lt.u32.totalorder %s1649_s28, %s1926_s21 }
  0x3a   : > { %p1652_p5 = pnand %p1651_p3, %p1650_p0 }
  0x3b   : > { %p1657_p2 = por %p1656_p1, %p1655_p9 }
  0x3c   : > { %p1653_p7 = pneg %p1652_p5 }
  0x3d   : > { %p1659_p6 = por %p1658_p4, %p1657_p2 }
  0x3f   : > { %p1660_p8 = pnand %p1659_p6, %p1653_p7 }
  0x41   : > { %1663 = shalt.err (!%p1660_p8)
}
  0x42   : > { %s1664_s30 = scalar_lea.vmem %s1928_s12, 384  ;;  %s1770_s14 = smov [#allocation4]  }
  0x43   : > { %p1665_p12 = scmp.ne.s32.totalorder %s1928_s12, %s1664_s30  ;;  %s1669_s24 = sshll.u32 %s1770_s14, 4  ;;  %s1670_s24 = int_to_ptr.vmem [resolvable:$false] %s1669_s24 }
  0x44   : > { %s1671_s6 = scalar_lea.vmem %s1670_s24, 768  ;;  %p1672_p5 = scmp.lt.s32.totalorder %s1928_s12, %s1670_s24 }
  0x45   : > { %p1667_p13 = pnand %p1665_p12, %p1651_p3  ;;  %p1673_p9 = scmp.lt.s32.totalorder %s1671_s6, %s1664_s30 }
  0x47   : > { %p1668_p0 = pneg %p1667_p13  ;;  %p1674_p1 = por %p1673_p9, %p1672_p5 }
  0x49   : > { %p1675_p2 = pnand %p1674_p1, %p1668_p0 }
  0x4b   : > { %1678 = shalt.err (!%p1675_p2)
}
  0x4c   : > { %1541 = dma.hbm_to_vmem [thread:$0]  (!%p1919_p11), %s1926_s21, 384, %s1928_s12, %s190_s22  }
  0x4d   : > { %p2623_p7 = scmp.ne.s32.totalorder %s2618_s27, 0 }
  0x4e   : > { %s1958_s28 = sand.u32 (!%p2623_p7), 1, %s1749_s16   ;;  %p2624_p3 = scmp.ne.s32.totalorder (!%p2623_p7), %s2616_s25, 0 }
  0x4f   : > { %212 = sbr.rel (%p2623_p7) target bundleno = 706 (0x2c2), region = 36  ;;  %s215_s9 = scalar_lea.sflag (!%p2623_p7), [#allocation5], %s1958_s28 }
  0x50   : > { %s1523_s8 = smul.u32 (!%p2623_p7), 24, %s1958_s28 }
  0x52   : > { %s218_s29 = scalar_lea.vmem (!%p2623_p7), [#allocation4], %s1523_s8 }
  0x56   : > { %1732 = dma.done.wait (%p2624_p3), %s215_s9, 384  }
  0x57   : > { %1734 = vsyncadd (%p2624_p3), %s215_s9, 4294966912  ;;  %p2625_p4 = scmp.ne.s32.totalorder %s2614_s23, 0 }
  0x59   : > { %1736 = dma.done.wait (%p2625_p4), [#allocation8], 1536  }
  0x5a   : > { %1738 = vsyncadd (%p2625_p4), [#allocation8], 4294965760  ;;  %v293_v0 = vlaneseq  ;;  %vm249_vm0 = vcmask 134144   ;;  %vm251_vm1 = vcmask 273544   ;;  %v1771_v1 = vmov 0.0   ;;  %v255_v4 = vld [vmem:[%s218_s29 + $0x10] sm:$0xff] }
  0x5b   : > { %250 = vst.msk [vmem:[#allocation2] sm:$0xf] %vm249_vm0, %v1771_v1  ;;  %1205 = vmatprep.mubr.f32.mxu0 %v1771_v1  ;;  %1276 = vmatprep.mubr.f32.mxu1 %v1771_v1  ;;  %v253_v5 = vld [vmem:[%s218_s29] sm:$0xff]  ;;  %v254_v6 = vld [vmem:[%s218_s29 + $0x8] sm:$0xff]  ;;  %s1772_s23 = smov 17   ;;  %s1773_s25 = smov 1  }
  0x5c   : > { %v1974_v2 = vshrl.u32 %v293_v0, 7  ;;  %252 = vst.msk [vmem:[#allocation2 + $0x18] sm:$0xf] %vm251_vm1, %v1771_v1  ;;  %263 = vrot.lane.b32.xlu1 %v255_v4, %s1772_s23  ;;  %259 = vrot.lane.b32.xlu0 %v253_v5, %s1772_s23  ;;  %v346_v10 = vld [vmem:[#allocation7 + $0x1] ss:$8 sm:$0xf] }
  0x5d   : > { %v347_v11 = vld [vmem:[#allocation7 + $0x1] ss:$8 sm:$0x30]  ;;  %v545_v13 = vld [vmem:[#allocation7 + $0x3] ss:$8 sm:$0xf] }
  0x5e   : > { %v1978_v3 = vsub.s32 0, %v1974_v2  ;;  %v1981_v7 = vsub.s32 1, %v1974_v2  ;;  %v1984_v8 = vsub.s32 2, %v1974_v2  ;;  %v1987_v9 = vsub.s32 3, %v1974_v2  ;;  %s1774_s27 = smov 16   ;;  %s1775_s12 = smov 2  }
  0x5f   : > { %v1989_v12 = vor.u32 %v347_v11, %v346_v10  ;;  %v546_v14 = vld [vmem:[#allocation7 + $0x3] ss:$8 sm:$0x30]  ;;  %v446_v16 = vld [vmem:[#allocation7 + $0x2] ss:$8 sm:$0xf] }
  0x60   : > { %v1991_v15 = vor.u32 %v546_v14, %v545_v13  ;;  %v447_v17 = vld [vmem:[#allocation7 + $0x2] ss:$8 sm:$0x30]  ;;  %261 = vrot.lane.b32.xlu0 %v254_v6, %s1772_s23  ;;  %v689_v25 = vld [vmem:[#allocation7 + $0x5] ss:$8 sm:$0xf] }
  0x61   : > { %v353_v18 = vrot.slane %v1989_v12, %v1978_v3  ;;  %v357_v19 = vrot.slane %v1989_v12, %v1981_v7  ;;  %v361_v20 = vrot.slane %v1989_v12, %v1984_v8  ;;  %v365_v21 = vrot.slane %v1989_v12, %v1987_v9  ;;  %v690_v26 = vld [vmem:[#allocation7 + $0x5] ss:$8 sm:$0x30]  ;;  %v888_v38 = vld [vmem:[#allocation7 + $0x7] ss:$8 sm:$0xf] }
  0x62   : > { %v552_v22 = vrot.slane %v1991_v15, %v1978_v3  ;;  %v556_v23 = vrot.slane %v1991_v15, %v1981_v7  ;;  %v2005_v24 = vor.u32 %v447_v17, %v446_v16  ;;  %v560_v32 = vrot.slane %v1991_v15, %v1984_v8  ;;  %v889_v39 = vld [vmem:[#allocation7 + $0x7] ss:$8 sm:$0x30]  ;;  %v789_v47 = vld [vmem:[#allocation7 + $0x6] ss:$8 sm:$0xf] }
  0x63   : > { %v374_v27 = vcombine.low %v353_v18, %v357_v19  ;;  %v375_v31 = vcombine.low %v361_v20, %v365_v21  ;;  %v564_v33 = vrot.slane %v1991_v15, %v1987_v9  ;;  %v2016_v34 = vor.u32 %v690_v26, %v689_v25  ;;  %v790_v48 = vld [vmem:[#allocation7 + $0x6] ss:$8 sm:$0x30]  ;;  %v289_v56 = vld [vmem:[#allocation7] ss:$8 sm:$0xf] }
  0x64   : > { %v573_v28 = vcombine.low %v552_v22, %v556_v23  ;;  %v453_v29 = vrot.slane %v2005_v24, %v1978_v3  ;;  %v457_v30 = vrot.slane %v2005_v24, %v1981_v7  ;;  %v461_v36 = vrot.slane %v2005_v24, %v1984_v8  ;;  %v290_v57 = vld [vmem:[#allocation7] ss:$8 sm:$0x30]  ;;  %s1776_s13 = smov 18   ;;  %s1777_s21 = smov 33  }
  0x65   : > { %377 = vrot.lane.b32.xlu1 %v374_v27, %s1773_s25  ;;  %v465_v37 = vrot.slane %v2005_v24, %v1987_v9  ;;  %v574_v40 = vcombine.low %v560_v32, %v564_v33  ;;  %v696_v41 = vrot.slane %v2016_v34, %v1978_v3  ;;  %v700_v42 = vrot.slane %v2016_v34, %v1981_v7  ;;  %v988_v6 = vld [vmem:[#allocation7 + $0x30] ss:$8 sm:$0xf]  ;;  %s1778_s22 = smov 32   ;;  %s1779_s11 = smov 34  }
  0x66   : > { %576 = vrot.lane.b32.xlu0 %v573_v28, %s1774_s27  ;;  %v474_v35 = vcombine.low %v453_v29, %v457_v30  ;;  %v2028_v43 = vor.u32 %v889_v39, %v888_v38  ;;  %v704_v45 = vrot.slane %v2016_v34, %v1984_v8  ;;  %v708_v46 = vrot.slane %v2016_v34, %v1987_v9  ;;  %v989_v10 = vld [vmem:[#allocation7 + $0x30] ss:$8 sm:$0x30]  ;;  %s1780_s30 = smov 111   ;;  %s1781_s14 = smov 126  }
  0x67   : > { %v475_v44 = vcombine.low %v461_v36, %v465_v37  ;;  %v717_v49 = vcombine.low %v696_v41, %v700_v42  ;;  %v2040_v52 = vor.u32 %v790_v48, %v789_v47  ;;  %v2048_v58 = vsub.s32 4, %v1974_v2  ;;  %s1782_s24 = smov 110   ;;  %s1783_s6 = smov 95  }
  0x68   : > { %v895_v50 = vrot.slane %v2028_v43, %v1978_v3  ;;  %v899_v51 = vrot.slane %v2028_v43, %v1981_v7  ;;  %v718_v53 = vcombine.low %v704_v45, %v708_v46  ;;  %v903_v54 = vrot.slane %v2028_v43, %v1984_v8  ;;  %s1784_s8 = smov 96   ;;  %s1785_s9 = smov 127  }
  0x69   : > { %379 = vrot.lane.b32.xlu1 %v375_v31, %s1773_s25  ;;  %v907_v55 = vrot.slane %v2028_v43, %v1987_v9  ;;  %v2051_v59 = vsub.s32 5, %v1974_v2  ;;  %v796_v61 = vrot.slane %v2040_v52, %v1978_v3  ;;  %v800_v62 = vrot.slane %v2040_v52, %v1981_v7  ;;  %s1786_s29 = smov 94   ;;  %s1787_s23 = smov 112  }
  0x6a   : > { %477 = vrot.lane.b32.xlu0 %v474_v35, %s1775_s12  ;;  %v916_v60 = vcombine.low %v895_v50, %v899_v51  ;;  %v291_v63 = vor.u32 %v290_v57, %v289_v56  ;;  %v804_v4 = vrot.slane %v2040_v52, %v1984_v8  ;;  %v808_v2 = vrot.slane %v2040_v52, %v1987_v9 }
  0x6b   : > { %v917_v0 = vcombine.low %v903_v54, %v907_v55  ;;  %v369_v5 = vrot.slane %v1989_v12, %v2048_v58  ;;  %v373_v16 = vrot.slane %v1989_v12, %v2051_v59  ;;  %v817_v20 = vcombine.low %v796_v61, %v800_v62 }
  0x6c   : > { %v304_v11 = vrot.slane %v291_v63, %v1984_v8  ;;  %v308_v13 = vrot.slane %v291_v63, %v1987_v9  ;;  %v296_v14 = vrot.slane %v291_v63, %v1978_v3  ;;  %v300_v17 = vrot.slane %v291_v63, %v1981_v7 }
  0x6d   : > { %578 = vrot.lane.b32.xlu1 %v574_v40, %s1774_s27  ;;  %v312_v18 = vrot.slane %v291_v63, %v2048_v58  ;;  %v316_v19 = vrot.slane %v291_v63, %v2051_v59  ;;  %v469_v21 = vrot.slane %v2005_v24, %v2048_v58  ;;  %v473_v22 = vrot.slane %v2005_v24, %v2051_v59 }
  0x6e   : > { %479 = vrot.lane.b32.xlu0 %v475_v44, %s1775_s12  ;;  %v318_v23 = vcombine.low %v304_v11, %v308_v13  ;;  %v818_v12 = vcombine.low %v804_v4, %v808_v2  ;;  %v990_v25 = vor.u32 %v989_v10, %v988_v6  ;;  %v2079_v26 = vcombine.low %v296_v14, %v300_v17 }
  0x6f   : > { %v319_v27 = vcombine.low %v312_v18, %v316_v19  ;;  %v376_v28 = vcombine.low %v369_v5, %v373_v16  ;;  %v568_v29 = vrot.slane %v1991_v15, %v2048_v58  ;;  %v572_v30 = vrot.slane %v1991_v15, %v2051_v59 }
  0x70   : > { %v476_v24 = vcombine.low %v469_v21, %v473_v22  ;;  %v995_v31 = vrot.slane %v990_v25, %v1978_v3  ;;  %v999_v32 = vrot.slane %v990_v25, %v1981_v7  ;;  %v1003_v35 = vrot.slane %v990_v25, %v1984_v8 }
  0x71   : > { %720 = vrot.lane.b32.xlu1 %v717_v49, %s1776_s13  ;;  %v575_v33 = vcombine.low %v568_v29, %v572_v30  ;;  %v1007_v36 = vrot.slane %v990_v25, %v1987_v9  ;;  %v712_v15 = vrot.slane %v2016_v34, %v2048_v58  ;;  %v716_v38 = vrot.slane %v2016_v34, %v2051_v59 }
  0x72   : > { %722 = vrot.lane.b32.xlu0 %v718_v53, %s1776_s13  ;;  %v1016_v37 = vcombine.low %v995_v31, %v999_v32  ;;  %v812_v7 = vrot.slane %v2040_v52, %v2048_v58  ;;  %v816_v8 = vrot.slane %v2040_v52, %v2051_v59  ;;  %v911_v39 = vrot.slane %v2028_v43, %v2048_v58 }
  0x73   : > { %v1017_v3 = vcombine.low %v1003_v35, %v1007_v36  ;;  %v719_v9 = vcombine.low %v712_v15, %v716_v38  ;;  %v915_v40 = vrot.slane %v2028_v43, %v2051_v59  ;;  %v1011_v41 = vrot.slane %v990_v25, %v2048_v58 }
  0x74   : > { %v819_v34 = vcombine.low %v812_v7, %v816_v8  ;;  %v1015_v42 = vrot.slane %v990_v25, %v2051_v59  ;;  %vm279_vm2 = vcmask 1043592   ;;  %vm280_vm3 = vcmask 1047556  }
  0x75   : > { %919 = vrot.lane.b32.xlu1 %v916_v60, %s1777_s21  ;;  %v918_v44 = vcombine.low %v911_v39, %v915_v40  ;;  %vm268_vm4 = vcmask 138240   ;;  %vm281_vm5 = vmor %vm280_vm3, %vm279_vm2  ;;  %vm270_vm6 = vcmask 1043456   ;;  %vm486_vm7 = vcmask 15360  }
  0x76   : > { %921 = vrot.lane.b32.xlu0 %v917_v0, %s1777_s21  ;;  %v1018_v45 = vcombine.low %v1011_v41, %v1015_v42  ;;  %vm729_vm8 = vcmask 146432   ;;  %vm928_vm9 = vcmask 269312   ;;  %vm829_vm10 = vcmask 261120  }
  0x77   : > { %vm386_vm11 = vcmask 7168   ;;  %vm1028_vm12 = vcmask 277504   ;;  %vm585_vm13 = vcmask 130048   ;;  %vm665_vm14 = vcmask 908288  }
  0x78   : > { %vm422_vm15 = vcmask 1039360   ;;  %vm864_vm1 = vcmask 785408   ;;  %vm1063_vm2 = vcmask 769024   ;;  %vm765_vm3 = vcmask 900096  }
  0x79   : > { %820 = vrot.lane.b32.xlu1 %v817_v20, %s1778_s22 }
  0x7a   : > { %822 = vrot.lane.b32.xlu0 %v818_v12, %s1778_s22 }
  0x7d   : > { %381 = vrot.lane.b32.xlu1 %v376_v28, %s1773_s25 }
  0x7e   : > { %481 = vrot.lane.b32.xlu0 %v476_v24, %s1775_s12 }
  0x81   : > { %580 = vrot.lane.b32.xlu1 %v575_v33, %s1774_s27 }
  0x82   : > { %1019 = vrot.lane.b32.xlu0 %v1016_v37, %s1779_s11 }
  0x85   : > { %1021 = vrot.lane.b32.xlu1 %v1017_v3, %s1779_s11 }
  0x86   : > { %724 = vrot.lane.b32.xlu0 %v719_v9, %s1776_s13 }
  0x89   : > { %824 = vrot.lane.b32.xlu1 %v819_v34, %s1778_s22 }
  0x8a   : > { %923 = vrot.lane.b32.xlu0 %v918_v44, %s1777_s21  ;;  %s1524_s21 = smul.u32 48, %s1958_s28 }
  0x8c   : > { %s246_s22 = scalar_lea.vmem [#allocation9], %s1524_s21 }
  0x8d   : > { %1023 = vrot.lane.b32.xlu1 %v1018_v45, %s1779_s11  ;;  %s1525_s11 = smul.u32 768, %s1757_s18  ;;  %s1367_s18 = scalar_lea.sflag [#allocation6], %s1958_s28 }
  0xce   : > { %v264_v46 = vpop.permute.xlu1 %263  ;;  %v260_v43 = vpop.permute.xlu0 %259 }
  0xcf   : > { %v267_v47 = vrot.slane %v264_v46, 4  ;;  %v265_v48 = vrot.slane %v260_v43, 4 }
  0xd1   : > { %285 = vst.msk [vmem:[#allocation2 + $0x18] sm:$0xf] %vm249_vm0, %v267_v47  ;;  %v269_v49 = vsel %vm268_vm4, %v265_v48, %v260_v43  ;;  %vm621_vm0 = vcmask 916480  }
  0xd2   : > { %282 = vst.msk [vmem:[#allocation2] sm:$0xff] %vm281_vm5, %v269_v49  ;;  %v262_v50 = vpop.permute.xlu0 %261  ;;  %vm964_vm5 = vcmask 777216  }
  0xd3   : > { %v266_v51 = vrot.slane %v262_v50, 4 }
  0xd5   : > { %v271_v52 = vsel %vm270_vm6, %v265_v48, %v266_v51  ;;  %v273_v53 = vsel %vm270_vm6, %v266_v51, %v267_v47 }
  0xd6   : > { %v2116_v55 = vsel %vm268_vm4, %v271_v52, %v262_v50  ;;  %v2118_v56 = vsel %vm268_vm4, %v273_v53, %v264_v46  ;;  %vm521_vm4 = vcmask 1031168  }
  0xd7   : > { %v2114_v54 = vpop.permute.xlu1 %377  ;;  %v324_v58 = vmul.f32 %v318_v23, %v2116_v55  ;;  %655 = vrot.lane.b32.xlu0 %v2116_v55, %s1780_s30  ;;  %v325_v60 = vmul.f32 %v319_v27, %v2118_v56 }
  0xd8   : > { %v2120_v57 = vpop.permute.xlu0 %576  ;;  %v643_v59 = vld [vmem:[#allocation2 + $0x18] sm:$0xf]  ;;  %v383_v33 = vrot.slane %v2114_v54, 4 }
  0xd9   : > { %v2126_v61 = vld [vmem:[#allocation2] sm:$0xff]  ;;  %337 = vst [vmem:[#allocation3 + $0x10] sm:$0xf] %v324_v58  ;;  %663 = vrot.lane.b32.xlu1 %v643_v59, %s1780_s30  ;;  %v330_v63 = vcombine.high %v324_v58, %v324_v58  ;;  %339 = vst [vmem:[#allocation3 + $0x20] sm:$0xf] %v325_v60  ;;  %v331_v2 = vcombine.high %v325_v60, %v325_v60  ;;  %v582_v39 = vrot.slane %v2120_v57, 4 }
  0xda   : > { %v323_v4 = vmul.f32 %v2079_v26, %v2126_v61  ;;  %v648_v21 = vcombine.high %v2126_v61, %v2126_v61  ;;  %v444_v38 = vld [vmem:[#allocation2 + $0x18] sm:$0xf]  ;;  %v387_v9 = vsel %vm386_vm11, %v383_v33, %v2114_v54 }
  0xdb   : > { %v2128_v62 = vpop.permute.xlu1 %379  ;;  %338 = vst [vmem:[#allocation3 + $0x18] sm:$0xf] %v330_v63  ;;  %340 = vst [vmem:[#allocation3 + $0x28] sm:$0xf] %v331_v2  ;;  %v2209_v44 = vmul.f32 %v387_v9, %v2126_v61  ;;  %v586_v48 = vsel %vm585_vm13, %v582_v39, %v2120_v57  ;;  %v344_v2 = vld [vmem:[#allocation2 + $0x18] sm:$0xf] }
  0xdc   : > { %v2131_v0 = vpop.permute.xlu0 %477  ;;  %v329_v10 = vcombine.high %v323_v4, %v323_v4  ;;  %335 = vst [vmem:[#allocation3] sm:$0xf] %v323_v4  ;;  %v384_v45 = vrot.slane %v2128_v62, 4  ;;  %v2236_v53 = vmul.f32 %v586_v48, %v2126_v61 }
  0xdd   : > { %v483_v5 = vrot.slane %v2131_v0, 4  ;;  %651 = vrot.lane.b32.xlu1 %v2126_v61, %s1780_s30 }
  0xde   : > { %336 = vst [vmem:[#allocation3 + $0x8] sm:$0xf] %v329_v10  ;;  %v388_v54 = vsel %vm270_vm6, %v383_v33, %v384_v45 }
  0xdf   : > { %v2136_v6 = vpop.permute.xlu1 %578  ;;  %v487_v13 = vsel %vm486_vm7, %v483_v5, %v2131_v0  ;;  %v389_v0 = vsel %vm386_vm11, %v388_v54, %v2128_v62 }
  0xe0   : > { %v2140_v11 = vpop.permute.xlu0 %479  ;;  %v2151_v17 = vmul.f32 %v487_v13, %v2126_v61  ;;  %v583_v4 = vrot.slane %v2136_v6, 4 }
  0xe1   : > { %659 = vrot.lane.b32.xlu1 %v2118_v56, %s1780_s30  ;;  %v484_v3 = vrot.slane %v2140_v11, 4 }
  0xe3   : > { %v2144_v14 = vpop.permute.xlu1 %720  ;;  %v488_v46 = vsel %vm270_vm6, %v483_v5, %v484_v3 }
  0xe4   : > { %v2148_v16 = vpop.permute.xlu0 %722  ;;  %v726_v18 = vrot.slane %v2144_v14, 4  ;;  %v489_v52 = vsel %vm486_vm7, %v488_v46, %v2140_v11 }
  0xe5   : > { %507 = vrot.lane.b32.xlu1 %v2151_v17, %s1781_s14  ;;  %v2249_v63 = vmul.f32 %v489_v52, %v2116_v55  ;;  %v687_v52 = vld [vmem:[#allocation2 + $0x18] sm:$0xf] }
  0xe6   : > { %v730_v12 = vsel %vm729_vm8, %v726_v18, %v2144_v14 }
  0xe7   : > { %v920_v19 = vpop.permute.xlu1 %919  ;;  %v2174_v29 = vmul.f32 %v730_v12, %v2126_v61  ;;  %v397_v12 = vmul.f32 %v389_v0, %v2116_v55  ;;  %v649_v0 = vcombine.high %v2116_v55, %v2116_v55 }
  0xe8   : > { %v2156_v20 = vpop.permute.xlu0 %921  ;;  %v925_v22 = vrot.slane %v920_v19, 4 }
  0xe9   : > { %v926_v23 = vrot.slane %v2156_v20, 4  ;;  %653 = vrot.lane.b32.xlu1 %v648_v21, %s1780_s30 }
  0xea   : > { %v929_v24 = vsel %vm928_vm9, %v925_v22, %v920_v19 }
  0xeb   : > { %v930_v25 = vsel %vm270_vm6, %v925_v22, %v926_v23  ;;  %v821_v26 = vpop.permute.xlu1 %820  ;;  %v2188_v36 = vmul.f32 %v929_v24, %v2126_v61 }
  0xec   : > { %v931_v27 = vsel %vm928_vm9, %v930_v25, %v2156_v20  ;;  %v2171_v28 = vpop.permute.xlu0 %822  ;;  %v826_v31 = vrot.slane %v821_v26, 4 }
  0xed   : > { %v2177_v30 = vmul.f32 %v931_v27, %v2116_v55  ;;  %753 = vrot.lane.b32.xlu1 %v2174_v29, %s1782_s24  ;;  %v827_v41 = vrot.slane %v2171_v28, 4  ;;  %v587_v27 = vsel %vm270_vm6, %v582_v39, %v583_v4 }
  0xee   : > { %v830_v15 = vsel %vm829_vm10, %v826_v31, %v821_v26 }
  0xef   : > { %v2180_v32 = vpop.permute.xlu1 %381  ;;  %v2203_v34 = vmul.f32 %v830_v15, %v2126_v61  ;;  %v831_v51 = vsel %vm270_vm6, %v826_v31, %v827_v41 }
  0xf0   : > { %v2185_v35 = vpop.permute.xlu0 %481  ;;  %v385_v57 = vrot.slane %v2180_v32, 4  ;;  %v832_v59 = vsel %vm829_vm10, %v831_v51, %v2171_v28 }
  0xf1   : > { %v485_v37 = vrot.slane %v2185_v35, 4  ;;  %952 = vrot.lane.b32.xlu1 %v2188_v36, %s1783_s6  ;;  %v2258_v5 = vmul.f32 %v832_v59, %v2116_v55  ;;  %v847_v14 = vcombine.high %v2203_v34, %v2203_v34 }
  0xf2   : > { %v390_v10 = vsel %vm270_vm6, %v384_v45, %v385_v57  ;;  %v399_v11 = vmul.f32 %v385_v57, %v344_v2  ;;  %v727_v57 = vrot.slane %v2148_v16, 4 }
  0xf3   : > { %v499_v7 = vmul.f32 %v485_v37, %v444_v38  ;;  %v2193_v8 = vpop.permute.xlu1 %580  ;;  %v490_v25 = vsel %vm270_vm6, %v484_v3, %v485_v37  ;;  %v588_v38 = vsel %vm585_vm13, %v587_v27, %v2136_v6  ;;  %v543_v3 = vld [vmem:[#allocation2 + $0x18] sm:$0xf] }
  0xf4   : > { %v2200_v40 = vpop.permute.xlu0 %1019  ;;  %v584_v24 = vrot.slane %v2193_v8, 4  ;;  %v407_v33 = vcombine.low %v399_v11, %v399_v11  ;;  %v491_v37 = vsel %vm486_vm7, %v490_v25, %v2185_v35  ;;  %v596_v35 = vmul.f32 %v588_v38, %v2116_v55  ;;  %v886_v25 = vld [vmem:[#allocation2 + $0x18] sm:$0xf] }
  0xf5   : > { %v1025_v42 = vrot.slane %v2200_v40, 4  ;;  %519 = vrot.lane.b32.xlu0 %v499_v7, %s1781_s14  ;;  %850 = vrot.lane.b32.xlu1 %v2203_v34, %s1784_s8  ;;  %v498_v7 = vmul.f32 %v491_v37, %v2118_v56  ;;  %v731_v28 = vsel %vm270_vm6, %v726_v18, %v727_v57  ;;  %vm1119_vm7 = vcmask 293888  }
  0xf6   : > { %v589_v9 = vsel %vm270_vm6, %v583_v4, %v584_v24  ;;  %v598_v39 = vmul.f32 %v584_v24, %v543_v3  ;;  %v650_v4 = vcombine.high %v2118_v56, %v2118_v56  ;;  %v604_v34 = vcombine.low %v596_v35, %v596_v35 }
  0xf7   : > { %v1029_v43 = vsel %vm1028_vm12, %v1025_v42, %v2200_v40  ;;  %v2217_v47 = vpop.permute.xlu1 %1021  ;;  %v590_v6 = vsel %vm585_vm13, %v589_v9, %v2193_v8  ;;  %v1788_v3 = vmov 0  }
  0xf8   : > { %v2224_v49 = vmul.f32 %v1029_v43, %v2126_v61  ;;  %v2226_v50 = vpop.permute.xlu0 %724  ;;  %v1026_v62 = vrot.slane %v2217_v47, 4  ;;  %v606_v48 = vcombine.low %v598_v39, %v598_v39  ;;  %v2319_v40 = vmul.f32 %v590_v6, %v2118_v56  ;;  %1619 = vset.pattern.permute.xlu0 %v1788_v3  ;;  %v1113_v39 = vld [vmem:[%s2608_s3] sm:$0xff] }
  0xf9   : > { %410 = vrot.lane.b32.xlu0 %v2209_v44, %s1785_s9  ;;  %v728_v46 = vrot.slane %v2226_v50, 4 }
  0xfa   : > { %1049 = vrot.lane.b32.xlu1 %v2224_v49, %s1786_s29  ;;  %v1030_v45 = vsel %vm270_vm6, %v1025_v42, %v1026_v62  ;;  %v1046_v11 = vcombine.high %v2224_v49, %v2224_v49  ;;  %v404_v49 = vcombine.low %v2209_v44, %v2209_v44 }
  0xfb   : > { %v2240_v58 = vpop.permute.xlu1 %824  ;;  %v1031_v51 = vsel %vm1028_vm12, %v1030_v45, %v2217_v47  ;;  %v742_v42 = vmul.f32 %v728_v46, %v687_v52  ;;  %v733_v2 = vsel %vm270_vm6, %v727_v57, %v728_v46 }
  0xfc   : > { %v2246_v60 = vpop.permute.xlu0 %923  ;;  %v828_v43 = vrot.slane %v2240_v58, 4  ;;  %v2323_v54 = vmul.f32 %v1031_v51, %v2116_v55 }
  0xfd   : > { %v927_v61 = vrot.slane %v2246_v60, 4  ;;  %609 = vrot.lane.b32.xlu0 %v2236_v53, %s1787_s23  ;;  %v750_v47 = vcombine.low %v742_v42, %v742_v42 }
  0xfe   : > { %511 = vrot.lane.b32.xlu1 %v2249_v63, %s1781_s14  ;;  %v833_v8 = vsel %vm270_vm6, %v827_v41, %v828_v43 }
  0xff   : > { %v932_v13 = vsel %vm270_vm6, %v926_v23, %v927_v61  ;;  %v2266_v19 = vpop.permute.xlu1 %1023  ;;  %v391_v23 = vsel %vm386_vm11, %v390_v10, %v2180_v32  ;;  %v834_v59 = vsel %vm829_vm10, %v833_v8, %v2240_v58  ;;  %v732_v58 = vsel %vm729_vm8, %v731_v28, %v2148_v16 }
 0x100   : > { %v933_v21 = vsel %vm928_vm9, %v932_v13, %v2246_v60  ;;  %v1027_v22 = vrot.slane %v2266_v19, 4  ;;  %v2297_v32 = vmul.f32 %v391_v23, %v2118_v56  ;;  %v841_v41 = vmul.f32 %v834_v59, %v2118_v56 }
 0x101   : > { %v2277_v20 = vmul.f32 %v933_v21, %v2118_v56  ;;  %854 = vrot.lane.b32.xlu0 %v2258_v5, %s1784_s8  ;;  %v740_v18 = vmul.f32 %v732_v58, %v2116_v55  ;;  %v734_v10 = vsel %vm729_vm8, %v733_v2, %v2226_v50  ;;  %v405_v13 = vcombine.low %v397_v12, %v397_v12  ;;  %v787_v21 = vld [vmem:[#allocation2 + $0x18] sm:$0xf] }
 0x102   : > { %v1032_v26 = vsel %vm270_vm6, %v1026_v62, %v1027_v22  ;;  %414 = vrot.lane.b32.xlu1 %v397_v12, %s1785_s9  ;;  %v741_v16 = vmul.f32 %v734_v10, %v2118_v56  ;;  %v504_v55 = vcombine.high %v2151_v17, %v2151_v17  ;;  %v603_v50 = vcombine.low %v2236_v53, %v2236_v53 }
 0x103   : > { %v1033_v31 = vsel %vm1028_vm12, %v1032_v26, %v2266_v19  ;;  %v506_v17 = vcombine.high %v498_v7, %v498_v7  ;;  %v747_v62 = vcombine.low %v2174_v29, %v2174_v29  ;;  %v842_v12 = vmul.f32 %v828_v43, %v787_v21 }
 0x104   : > { %v2294_v15 = vmul.f32 %v1033_v31, %v2118_v56  ;;  %v505_v56 = vcombine.high %v2249_v63, %v2249_v63  ;;  %v749_v44 = vcombine.low %v741_v16, %v741_v16  ;;  %v946_v63 = vcombine.low %v2188_v36, %v2188_v36 }
 0x105   : > { %420 = vrot.lane.b32.xlu0 %v407_v33, %s1785_s9  ;;  %v748_v53 = vcombine.low %v740_v18, %v740_v18  ;;  %v941_v23 = vmul.f32 %v927_v61, %v886_v25  ;;  %v948_v29 = vcombine.low %v2277_v20, %v2277_v20  ;;  %v947_v36 = vcombine.low %v2177_v30, %v2177_v30  ;;  %v986_v61 = vld [vmem:[#allocation2 + $0x18] sm:$0xf] }
 0x106   : > { %418 = vrot.lane.b32.xlu1 %v2297_v32, %s1785_s9  ;;  %v406_v27 = vcombine.low %v2297_v32, %v2297_v32  ;;  %v605_v60 = vcombine.low %v2319_v40, %v2319_v40  ;;  %v1041_v24 = vmul.f32 %v1027_v22, %v986_v61  ;;  %v848_v31 = vcombine.high %v2258_v5, %v2258_v5 }
 0x107   : > { %v949_v26 = vcombine.low %v941_v23, %v941_v23  ;;  %v849_v33 = vcombine.high %v841_v41, %v841_v41  ;;  %v1047_v19 = vcombine.high %v2323_v54, %v2323_v54  ;;  %v1048_v5 = vcombine.high %v2294_v15, %v2294_v15 }
 0x109   : > { %515 = vrot.lane.b32.xlu0 %v498_v7, %s1781_s14 }
 0x10a   : > { %613 = vrot.lane.b32.xlu1 %v596_v35, %s1787_s23 }
 0x10d   : > { %619 = vrot.lane.b32.xlu0 %v606_v48, %s1787_s23 }
 0x10e   : > { %617 = vrot.lane.b32.xlu1 %v2319_v40, %s1787_s23 }
 0x111   : > { %1053 = vrot.lane.b32.xlu0 %v2323_v54, %s1786_s29 }
 0x112   : > { %763 = vrot.lane.b32.xlu1 %v750_v47, %s1782_s24 }
 0x115   : > { %657 = vrot.lane.b32.xlu0 %v649_v0, %s1780_s30 }
 0x116   : > { %858 = vrot.lane.b32.xlu1 %v841_v41, %s1784_s8 }
 0x119   : > { %661 = vrot.lane.b32.xlu0 %v650_v4, %s1780_s30  ;;  %s1383_s30 = sshll.u32 %s246_s22, 4  ;;  %s2558_s30 = int_to_ptr.vmem [resolvable:$true] %s1383_s30 }
 0x11a   : > { %852 = vrot.lane.b32.xlu1 %v847_v14, %s1784_s8 }
 0x11d   : > { %757 = vrot.lane.b32.xlu0 %v740_v18, %s1782_s24 }
 0x11e   : > { %1051 = vrot.lane.b32.xlu1 %v1046_v11, %s1786_s29 }
 0x121   : > { %761 = vrot.lane.b32.xlu0 %v741_v16, %s1782_s24 }
 0x122   : > { %412 = vrot.lane.b32.xlu1 %v405_v13, %s1785_s9 }
 0x125   : > { %509 = vrot.lane.b32.xlu0 %v504_v55, %s1781_s14 }
 0x126   : > { %611 = vrot.lane.b32.xlu1 %v604_v34, %s1787_s23 }
 0x129   : > { %408 = vrot.lane.b32.xlu0 %v404_v49, %s1785_s9 }
 0x12a   : > { %513 = vrot.lane.b32.xlu1 %v505_v56, %s1781_s14 }
 0x12d   : > { %607 = vrot.lane.b32.xlu0 %v603_v50, %s1787_s23 }
 0x12e   : > { %517 = vrot.lane.b32.xlu1 %v506_v17, %s1781_s14 }
 0x131   : > { %751 = vrot.lane.b32.xlu0 %v747_v62, %s1782_s24 }
 0x132   : > { %759 = vrot.lane.b32.xlu1 %v749_v44, %s1782_s24 }
 0x135   : > { %950 = vrot.lane.b32.xlu0 %v946_v63, %s1783_s6 }
 0x136   : > { %862 = vrot.lane.b32.xlu1 %v842_v12, %s1784_s8 }
 0x139   : > { %755 = vrot.lane.b32.xlu0 %v748_v53, %s1782_s24 }
 0x13a   : > { %958 = vrot.lane.b32.xlu1 %v948_v29, %s1783_s6 }
 0x13d   : > { %954 = vrot.lane.b32.xlu0 %v947_v36, %s1783_s6 }
 0x13e   : > { %962 = vrot.lane.b32.xlu1 %v949_v26, %s1783_s6 }
 0x141   : > { %416 = vrot.lane.b32.xlu0 %v406_v27, %s1785_s9  ;;  %s1789_s9 = smov [#allocation9]  }
 0x142   : > { %1057 = vrot.lane.b32.xlu1 %v2294_v15, %s1786_s29 }
 0x145   : > { %615 = vrot.lane.b32.xlu0 %v605_v60, %s1787_s23 }
 0x146   : > { %1061 = vrot.lane.b32.xlu1 %v1041_v24, %s1786_s29 }
 0x149   : > { %856 = vrot.lane.b32.xlu0 %v848_v31, %s1784_s8  ;;  %v656_v7 = vpop.permute.xlu0 %655 }
 0x14b   : > { %v664_v37 = vpop.permute.xlu1 %663 }
 0x14d   : > { %860 = vrot.lane.b32.xlu0 %v849_v33, %s1784_s8  ;;  %s1679_s8 = scalar_lea.vmem %s2558_s30, 768 }
 0x14e   : > { %p1680_p11 = scmp.ne.s32.totalorder %s2558_s30, %s1679_s8 }
 0x14f   : > { %v652_v32 = vpop.permute.xlu1 %651 }
 0x150   : > { %p1681_p6 = pnand %p1680_p11, %p1907_p10 }
 0x151   : > { %956 = vrot.lane.b32.xlu0 %v2177_v30, %s1783_s6 }
 0x152   : > { %p1682_p8 = pneg %p1681_p6 }
 0x153   : > { %v660_v38 = vpop.permute.xlu1 %659 }
 0x155   : > { %960 = vrot.lane.b32.xlu0 %v2277_v20, %s1783_s6  ;;  %s2556_s6 = scalar_lea.hbm %s2609_s4, %s1525_s11 }
 0x157   : > { %v2416_v22 = vpop.permute.xlu1 %507 }
 0x159   : > { %1055 = vrot.lane.b32.xlu0 %v1047_v19, %s1786_s29 }
 0x15b   : > { %v654_v9 = vpop.permute.xlu1 %653 }
 0x15c   : > { %v666_v30 = vsel %vm665_vm14, %v652_v32, %v654_v9  ;;  %v667_v20 = vsel %vm665_vm14, %v654_v9, %v656_v7 }
 0x15d   : > { %1059 = vrot.lane.b32.xlu0 %v1048_v5, %s1786_s29  ;;  %678 = vst [vmem:[#allocation3 + $0x60] sm:$0xf] %v666_v30  ;;  %679 = vst [vmem:[#allocation3 + $0x68] sm:$0xf] %v667_v20  ;;  %s1683_s29 = sshll.u32 %s1789_s9, 4  ;;  %s1684_s29 = int_to_ptr.vmem [resolvable:$false] %s1683_s29 }
 0x15e   : > { %s1685_s23 = scalar_lea.vmem %s1684_s29, 1536  ;;  %p1686_p12 = scmp.lt.s32.totalorder %s2558_s30, %s1684_s29 }
 0x15f   : > { %v2427_v35 = vpop.permute.xlu1 %753  ;;  %p1687_p13 = scmp.lt.s32.totalorder %s1685_s23, %s1679_s8 }
 0x161   : > { %1116 = vperm.xlu0 %1619, %v1113_v39   ;;  %p1688_p0 = por %p1687_p13, %p1686_p12 }
 0x163   : > { %v2429_v15 = vpop.permute.xlu1 %952  ;;  %p1689_p5 = pnand %p1688_p0, %p1682_p8 }
 0x167   : > { %v2431_v45 = vpop.permute.xlu0 %519  ;;  %v851_v46 = vpop.permute.xlu1 %850 }
 0x16b   : > { %v2433_v6 = vpop.permute.xlu0 %410 }
 0x16c   : > { %v1050_v43 = vpop.permute.xlu1 %1049 }
 0x16f   : > { %v2435_v48 = vpop.permute.xlu0 %609 }
 0x170   : > { %v2437_v51 = vpop.permute.xlu1 %511 }
 0x173   : > { %v2439_v52 = vpop.permute.xlu0 %854 }
 0x174   : > { %v2441_v40 = vpop.permute.xlu1 %414 }
 0x177   : > { %v421_v42 = vpop.permute.xlu0 %420 }
 0x178   : > { %v2443_v54 = vpop.permute.xlu1 %418 }
 0x179   : > { %v428_v8 = vsel %vm422_vm15, %v2443_v54, %v421_v42 }
 0x17a   : > { %440 = vst [vmem:[#allocation3 + $0x28] sm:$0xf0] %v428_v8 }
 0x17b   : > { %v2447_v57 = vpop.permute.xlu0 %515 }
 0x17c   : > { %v2449_v47 = vpop.permute.xlu1 %613 }
 0x17f   : > { %v620_v59 = vpop.permute.xlu0 %619 }
 0x180   : > { %v2451_v0 = vpop.permute.xlu1 %617 }
 0x181   : > { %v627_v28 = vsel %vm621_vm0, %v2451_v0, %v620_v59 }
 0x182   : > { %639 = vst [vmem:[#allocation3 + $0x58] sm:$0xf0] %v627_v28 }
 0x183   : > { %v2455_v41 = vpop.permute.xlu0 %1053 }
 0x184   : > { %v764_v4 = vpop.permute.xlu1 %763 }
 0x187   : > { %v658_v58 = vpop.permute.xlu0 %657 }
 0x188   : > { %v668_v2 = vsel %vm665_vm14, %v656_v7, %v658_v58  ;;  %v669_v14 = vsel %vm665_vm14, %v658_v58, %v660_v38  ;;  %v2459_v18 = vpop.permute.xlu1 %858 }
 0x189   : > { %680 = vst [vmem:[#allocation3 + $0x70] sm:$0xf] %v668_v2  ;;  %681 = vst [vmem:[#allocation3 + $0x78] sm:$0xf] %v669_v14 }
 0x18b   : > { %v662_v10 = vpop.permute.xlu0 %661 }
 0x18c   : > { %v670_v11 = vsel %vm665_vm14, %v660_v38, %v662_v10  ;;  %v671_v16 = vsel %vm665_vm14, %v662_v10, %v664_v37  ;;  %v853_v13 = vpop.permute.xlu1 %852 }
 0x18d   : > { %682 = vst [vmem:[#allocation3 + $0x80] sm:$0xf] %v670_v11  ;;  %683 = vst [vmem:[#allocation3 + $0x88] sm:$0xf] %v671_v16  ;;  %v865_v55 = vsel %vm864_vm1, %v851_v46, %v853_v13  ;;  %v866_v34 = vsel %vm864_vm1, %v853_v13, %v2439_v52 }
 0x18e   : > { %877 = vst [vmem:[#allocation3 + $0x90] sm:$0xf] %v865_v55  ;;  %878 = vst [vmem:[#allocation3 + $0x98] sm:$0xf] %v866_v34 }
 0x18f   : > { %v2466_v49 = vpop.permute.xlu0 %757 }
 0x190   : > { %v1052_v56 = vpop.permute.xlu1 %1051 }
 0x191   : > { %v1064_v50 = vsel %vm1063_vm2, %v1050_v43, %v1052_v56  ;;  %v1065_v17 = vsel %vm1063_vm2, %v1052_v56, %v2455_v41 }
 0x192   : > { %1076 = vst [vmem:[#allocation3 + $0xc0] sm:$0xf] %v1064_v50  ;;  %1077 = vst [vmem:[#allocation3 + $0xc8] sm:$0xf] %v1065_v17  ;;  %v2525_v17 = vld [vmem:[%s2606_s1] sm:$0xff] }
 0x193   : > { %v762_v62 = vpop.permute.xlu0 %761 }
 0x194   : > { %v771_v44 = vsel %vm765_vm3, %v762_v62, %v764_v4  ;;  %v413_v63 = vpop.permute.xlu1 %412 }
 0x195   : > { %783 = vst [vmem:[#allocation3 + $0x88] sm:$0xf0] %v771_v44  ;;  %v424_v21 = vsel %vm422_vm15, %v2433_v6, %v413_v63  ;;  %v425_v12 = vsel %vm422_vm15, %v413_v63, %v2441_v40 }
 0x196   : > { %436 = vst [vmem:[#allocation3 + $0x8] sm:$0xf0] %v424_v21  ;;  %437 = vst [vmem:[#allocation3 + $0x10] sm:$0xf0] %v425_v12 }
 0x197   : > { %v510_v53 = vpop.permute.xlu0 %509 }
 0x198   : > { %v522_v25 = vsel %vm521_vm4, %v2416_v22, %v510_v53  ;;  %v523_v23 = vsel %vm521_vm4, %v510_v53, %v2437_v51  ;;  %v612_v29 = vpop.permute.xlu1 %611 }
 0x199   : > { %534 = vst [vmem:[#allocation3 + $0x30] sm:$0xf] %v522_v25  ;;  %535 = vst [vmem:[#allocation3 + $0x38] sm:$0xf] %v523_v23  ;;  %v623_v36 = vsel %vm621_vm0, %v2435_v48, %v612_v29  ;;  %v624_v26 = vsel %vm621_vm0, %v612_v29, %v2449_v47 }
 0x19a   : > { %635 = vst [vmem:[#allocation3 + $0x38] sm:$0xf0] %v623_v36  ;;  %636 = vst [vmem:[#allocation3 + $0x40] sm:$0xf0] %v624_v26 }
 0x19b   : > { %v409_v27 = vpop.permute.xlu0 %408 }
 0x19c   : > { %v423_v60 = vsel %vm422_vm15, %v409_v27, %v2433_v6  ;;  %v514_v61 = vpop.permute.xlu1 %513 }
 0x19d   : > { %435 = vst [vmem:[#allocation3] sm:$0xf0] %v423_v60  ;;  %v524_v24 = vsel %vm521_vm4, %v2437_v51, %v514_v61  ;;  %v525_v31 = vsel %vm521_vm4, %v514_v61, %v2447_v57  ;;  %v1084_v22 = vld [vmem:[#allocation3 + $0x8] sm:$0xff]  ;;  %v1085_v27 = vld [vmem:[#allocation3 + $0x10] sm:$0xff] }
 0x19e   : > { %536 = vst [vmem:[#allocation3 + $0x40] sm:$0xf] %v524_v24  ;;  %537 = vst [vmem:[#allocation3 + $0x48] sm:$0xf] %v525_v31 }
 0x19f   : > { %v608_v33 = vpop.permute.xlu0 %607 }
 0x1a0   : > { %v622_v37 = vsel %vm621_vm0, %v608_v33, %v2435_v48  ;;  %v518_v32 = vpop.permute.xlu1 %517 }
 0x1a1   : > { %634 = vst [vmem:[#allocation3 + $0x30] sm:$0xf0] %v622_v37  ;;  %v526_v38 = vsel %vm521_vm4, %v2447_v57, %v518_v32  ;;  %v527_v19 = vsel %vm521_vm4, %v518_v32, %v2431_v45  ;;  %v1090_v5 = vld [vmem:[#allocation3 + $0x38] sm:$0xff] }
 0x1a2   : > { %538 = vst [vmem:[#allocation3 + $0x50] sm:$0xf] %v526_v38  ;;  %539 = vst [vmem:[#allocation3 + $0x58] sm:$0xf] %v527_v19  ;;  %v1497_v7 = vpack.c.bf16 %v1090_v5, %v1084_v22 }
 0x1a3   : > { %v752_v3 = vpop.permute.xlu0 %751 }
 0x1a4   : > { %v766_v9 = vsel %vm765_vm3, %v752_v3, %v2427_v35  ;;  %v760_v30 = vpop.permute.xlu1 %759  ;;  %1498 = vmatprep.subr.bf16.mxu0 %v1497_v7  ;;  %v1083_v6 = vld [vmem:[#allocation3] sm:$0xff] }
 0x1a5   : > { %778 = vst [vmem:[#allocation3 + $0x60] sm:$0xf0] %v766_v9  ;;  %v769_v20 = vsel %vm765_vm3, %v2466_v49, %v760_v30  ;;  %v770_v39 = vsel %vm765_vm3, %v760_v30, %v762_v62  ;;  %v1091_v21 = vld [vmem:[#allocation3 + $0x40] sm:$0xff] }
 0x1a6   : > { %781 = vst [vmem:[#allocation3 + $0x78] sm:$0xf0] %v769_v20  ;;  %782 = vst [vmem:[#allocation3 + $0x80] sm:$0xf0] %v770_v39  ;;  %v1507_v60 = vpack.c.bf16 %v1091_v21, %v1085_v27 }
 0x1a7   : > { %v951_v45 = vpop.permute.xlu0 %950 }
 0x1a8   : > { %v965_v46 = vsel %vm964_vm5, %v951_v45, %v2429_v15  ;;  %v1089_v43 = vld [vmem:[#allocation3 + $0x30] sm:$0xff] }
 0x1a9   : > { %977 = vst [vmem:[#allocation3 + $0x90] sm:$0xf0] %v965_v46  ;;  %v1499_v48 = vpack.c.bf16 %v1089_v43, %v1083_v6  ;;  %v1094_v56 = vld [vmem:[#allocation3 + $0x58] sm:$0xff]  ;;  %v1100_v46 = vld [vmem:[#allocation3 + $0x88] sm:$0xff] }
 0x1ab   : > { %v756_v51 = vpop.permute.xlu0 %755  ;;  %1500 = vmatpush1.bf16.msra.mxu0 %v1499_v48 }
 0x1ac   : > { %v767_v42 = vsel %vm765_vm3, %v2427_v35, %v756_v51  ;;  %v768_v8 = vsel %vm765_vm3, %v756_v51, %v2466_v49  ;;  %v863_v35 = vpop.permute.xlu1 %862 }
 0x1ad   : > { %779 = vst [vmem:[#allocation3 + $0x68] sm:$0xf0] %v767_v42  ;;  %780 = vst [vmem:[#allocation3 + $0x70] sm:$0xf0] %v768_v8  ;;  %v1098_v19 = vld [vmem:[#allocation3 + $0x78] sm:$0xff] }
 0x1af   : > { %v955_v57 = vpop.permute.xlu0 %954 }
 0x1b0   : > { %v966_v59 = vsel %vm964_vm5, %v2429_v15, %v955_v57  ;;  %v1101_v14 = vld [vmem:[#allocation3 + $0x90] sm:$0xff]  ;;  %v959_v50 = vpop.permute.xlu1 %958 }
 0x1b1   : > { %978 = vst [vmem:[#allocation3 + $0x98] sm:$0xf0] %v966_v59 }
 0x1b3   : > { %v417_v28 = vpop.permute.xlu0 %416 }
 0x1b4   : > { %v426_v4 = vsel %vm422_vm15, %v2441_v40, %v417_v28  ;;  %v427_v58 = vsel %vm422_vm15, %v417_v28, %v2443_v54  ;;  %v1096_v15 = vld [vmem:[#allocation3 + $0x68] sm:$0xff]  ;;  %v1095_v40 = vld [vmem:[#allocation3 + $0x60] sm:$0xff]  ;;  %v1097_v7 = vld [vmem:[#allocation3 + $0x70] sm:$0xff] }
 0x1b5   : > { %438 = vst [vmem:[#allocation3 + $0x18] sm:$0xf0] %v426_v4  ;;  %439 = vst [vmem:[#allocation3 + $0x20] sm:$0xf0] %v427_v58  ;;  %v1503_v55 = vpack.c.bf16 %v1101_v14, %v1095_v40 }
 0x1b7   : > { %v616_v2 = vpop.permute.xlu0 %615 }
 0x1b8   : > { %v625_v10 = vsel %vm621_vm0, %v2449_v47, %v616_v2  ;;  %v626_v11 = vsel %vm621_vm0, %v616_v2, %v2451_v0  ;;  %v1102_v16 = vld [vmem:[#allocation3 + $0x98] sm:$0xff]  ;;  %v1108_v47 = vld [vmem:[#allocation3 + $0xc8] sm:$0xf] }
 0x1b9   : > { %637 = vst [vmem:[#allocation3 + $0x48] sm:$0xf0] %v625_v10  ;;  %638 = vst [vmem:[#allocation3 + $0x50] sm:$0xf0] %v626_v11  ;;  %v1501_v13 = vpack.c.bf16 %v1102_v16, %v1096_v15  ;;  %v1088_v0 = vld [vmem:[#allocation3 + $0x28] sm:$0xff] }
 0x1ba   : > { %v1513_v44 = vpack.c.bf16 %v1094_v56, %v1088_v0 }
 0x1bb   : > { %v857_v34 = vpop.permute.xlu0 %856  ;;  %1502 = vmatprep.subr.bf16.mxu0 %v1501_v13 }
 0x1bc   : > { %v867_v54 = vsel %vm864_vm1, %v2439_v52, %v857_v34  ;;  %v868_v49 = vsel %vm864_vm1, %v857_v34, %v2459_v18  ;;  %1504 = vmatpush1.bf16.msra.mxu0 %v1503_v55  ;;  %v1107_v52 = vld [vmem:[#allocation3 + $0xc0] sm:$0xf]  ;;  %v1086_v63 = vld [vmem:[#allocation3 + $0x18] sm:$0xff] }
 0x1bd   : > { %879 = vst [vmem:[#allocation3 + $0xa0] sm:$0xf] %v867_v54  ;;  %880 = vst [vmem:[#allocation3 + $0xa8] sm:$0xf] %v868_v49  ;;  %1485 = vmatprep.subr.msk.mxu0 %vm270_vm6, %v1108_v47  ;;  %v1087_v23 = vld [vmem:[#allocation3 + $0x20] sm:$0xff] }
 0x1bf   : > { %v861_v62 = vpop.permute.xlu0 %860 }
 0x1c0   : > { %v869_v12 = vsel %vm864_vm1, %v2459_v18, %v861_v62  ;;  %v870_v53 = vsel %vm864_vm1, %v861_v62, %v863_v35  ;;  %1486 = vmatpush1.msk.msra.mxu0 %vm270_vm6, %v1107_v52  ;;  %v1092_v25 = vld [vmem:[#allocation3 + $0x48] sm:$0xff]  ;;  %v1093_v29 = vld [vmem:[#allocation3 + $0x50] sm:$0xff]  ;;  %v963_v18 = vpop.permute.xlu1 %962 }
 0x1c1   : > { %881 = vst [vmem:[#allocation3 + $0xb0] sm:$0xf] %v869_v12  ;;  %882 = vst [vmem:[#allocation3 + $0xb8] sm:$0xf] %v870_v53  ;;  %1514 = vmatprep.subr.bf16.mxu0 %v1513_v44  ;;  %v1505_v36 = vpack.c.bf16 %v1092_v25, %v1086_v63  ;;  %1487 = vmatmul.mubr.msk.f32.vlgmr.msra.gmra.mrb[0].mxu0 %vm1119_vm7, %v2525_v17  ;;  %v1515_v26 = vpack.c.bf16 %v1093_v29, %v1087_v23 }
 0x1c2   : > { %1347 = vmatprep.mubr.f32.mxu0 %v1771_v1 }
 0x1c3   : > { %1506 = vmatprep.subr.bf16.mxu1 %v1505_v36  ;;  %v957_v61 = vpop.permute.xlu0 %956  ;;  %1516 = vmatpush1.bf16.msra.mxu0 %v1515_v26 }
 0x1c4   : > { %v967_v24 = vsel %vm964_vm5, %v955_v57, %v957_v61  ;;  %v968_v31 = vsel %vm964_vm5, %v957_v61, %v959_v50  ;;  %1508 = vmatpush1.bf16.msra.mxu1 %v1507_v60  ;;  %v1058_v38 = vpop.permute.xlu1 %1057 }
 0x1c5   : > { %979 = vst [vmem:[#allocation3 + $0xa0] sm:$0xf0] %v967_v24  ;;  %980 = vst [vmem:[#allocation3 + $0xa8] sm:$0xf0] %v968_v31 }
 0x1c7   : > { %v961_v33 = vpop.permute.xlu0 %960 }
 0x1c8   : > { %v969_v37 = vsel %vm964_vm5, %v959_v50, %v961_v33  ;;  %v970_v32 = vsel %vm964_vm5, %v961_v33, %v963_v18  ;;  %v1062_v39 = vpop.permute.xlu1 %1061 }
 0x1c9   : > { %981 = vst [vmem:[#allocation3 + $0xb0] sm:$0xf0] %v969_v37  ;;  %982 = vst [vmem:[#allocation3 + $0xb8] sm:$0xf0] %v970_v32 }
 0x1cb   : > { %v1056_v1 = vpop.permute.xlu0 %1055 }
 0x1cc   : > { %v1066_v22 = vsel %vm1063_vm2, %v2455_v41, %v1056_v1  ;;  %v1067_v5 = vsel %vm1063_vm2, %v1056_v1, %v1058_v38  ;;  %v1104_v3 = vld [vmem:[#allocation3 + $0xa8] sm:$0xff]  ;;  %v1103_v9 = vld [vmem:[#allocation3 + $0xa0] sm:$0xff] }
 0x1cd   : > { %1078 = vst [vmem:[#allocation3 + $0xd0] sm:$0xf] %v1066_v22  ;;  %1079 = vst [vmem:[#allocation3 + $0xd8] sm:$0xf] %v1067_v5  ;;  %v1509_v30 = vpack.c.bf16 %v1104_v3, %v1098_v19  ;;  %v1511_v20 = vpack.c.bf16 %v1103_v9, %v1097_v7  ;;  %v1099_v41 = vld [vmem:[#allocation3 + $0x80] sm:$0xff] }
 0x1cf   : > { %1510 = vmatprep.subr.bf16.mxu1 %v1509_v30  ;;  %v1060_v45 = vpop.permute.xlu0 %1059 }
 0x1d0   : > { %v1068_v6 = vsel %vm1063_vm2, %v1058_v38, %v1060_v45  ;;  %v1069_v43 = vsel %vm1063_vm2, %v1060_v45, %v1062_v39  ;;  %1512 = vmatpush1.bf16.msra.mxu1 %v1511_v20  ;;  %v1106_v48 = vld [vmem:[#allocation3 + $0xb8] sm:$0xff]  ;;  %v1105_v51 = vld [vmem:[#allocation3 + $0xb0] sm:$0xff] }
 0x1d1   : > { %1080 = vst [vmem:[#allocation3 + $0xe0] sm:$0xf] %v1068_v6  ;;  %1081 = vst [vmem:[#allocation3 + $0xe8] sm:$0xf] %v1069_v43  ;;  %v1517_v42 = vpack.c.bf16 %v1106_v48, %v1100_v46  ;;  %v1519_v8 = vpack.c.bf16 %v1105_v51, %v1099_v41 }
 0x1d3   : > { %1518 = vmatprep.subr.bf16.mxu0 %v1517_v42 }
 0x1d4   : > { %1520 = vmatpush1.bf16.msra.mxu0 %v1519_v8  ;;  %v1110_v57 = vld [vmem:[#allocation3 + $0xd8] sm:$0xf]  ;;  %v1109_v59 = vld [vmem:[#allocation3 + $0xd0] sm:$0xf] }
 0x1d5   : > { %1488 = vmatprep.subr.msk.mxu1 %vm270_vm6, %v1110_v57 }
 0x1d6   : > { %1489 = vmatpush1.msk.msra.mxu1 %vm270_vm6, %v1109_v59 }
 0x1d7   : > { %1490 = vmatmul.mubr.msk.f32.vlgmr.msra.gmra.mrb[0].mxu1 %vm1119_vm7, %v2525_v17 }
 0x1d8   : > { %v1112_v28 = vld [vmem:[#allocation3 + $0xe8] sm:$0xf]  ;;  %v1111_v4 = vld [vmem:[#allocation3 + $0xe0] sm:$0xf] }
 0x1d9   : > { %1491 = vmatprep.subr.msk.mxu0 %vm270_vm6, %v1112_v28 }
 0x1da   : > { %1492 = vmatpush1.msk.msra.mxu0 %vm270_vm6, %v1111_v4 }
 0x1db   : > { %1493 = vmatmul.mubr.msk.f32.vlgmr.msra.gmra.mrb[2].mxu0 %vm1119_vm7, %v2525_v17 }
 0x1e0   : > { %v1117_v58 = vpop.permute.xlu0 %1116 }
 0x294   : > { %v1207_v35 = vpop.f32.mrb[0].mxu0 }
 0x295   : > { %v1208_v2 = vadd.f32 %v1207_v35, %v1117_v58  ;;  %v1209_v14 = vpop.f32.mrb[1].mxu0 }
 0x296   : > { %v1210_v10 = vadd.f32 %v1209_v14, %v1117_v58 }
 0x297   : > { %v1354_v11 = vmax.f32 %v1208_v2, 0.0 }
 0x298   : > { %v1355_v15 = vmax.f32 %v1210_v10, 0.0 }
 0x299   : > { %1360 = vst [vmem:[%s246_s22] sm:$0xff] %v1354_v11 }
 0x29a   : > { %1361 = vst [vmem:[%s246_s22 + $0x8] sm:$0xff] %v1355_v15 }
 0x2aa   : > { %v1278_v16 = vpop.f32.mrb[0].mxu1 }
 0x2ab   : > { %v1279_v13 = vadd.f32 %v1278_v16, %v1117_v58  ;;  %v1280_v40 = vpop.f32.mrb[1].mxu1 }
 0x2ac   : > { %v1281_v55 = vadd.f32 %v1280_v40, %v1117_v58 }
 0x2ad   : > { %v1356_v34 = vmax.f32 %v1279_v13, 0.0 }
 0x2ae   : > { %v1357_v54 = vmax.f32 %v1281_v55, 0.0  ;;  %v1349_v49 = vpop.f32.mrb[2].mxu0 }
 0x2af   : > { %1362 = vst [vmem:[%s246_s22 + $0x10] sm:$0xff] %v1356_v34  ;;  %v1350_v47 = vadd.f32 %v1349_v49, %v1117_v58  ;;  %v1351_v56 = vpop.f32.mrb[3].mxu0 }
 0x2b0   : > { %1363 = vst [vmem:[%s246_s22 + $0x18] sm:$0xff] %v1357_v54  ;;  %v1352_v50 = vadd.f32 %v1351_v56, %v1117_v58 }
 0x2b1   : > { %v1358_v0 = vmax.f32 %v1350_v47, 0.0 }
 0x2b2   : > { %v1359_v17 = vmax.f32 %v1352_v50, 0.0 }
 0x2b3   : > { %1364 = vst [vmem:[%s246_s22 + $0x20] sm:$0xff] %v1358_v0 }
 0x2b4   : > { %1365 = vst [vmem:[%s246_s22 + $0x28] sm:$0xff] %v1359_v17 }
 0x2b5   : > { %1692 = shalt.err (!%p1689_p5)
}
 0x2b6   : > { %s1693_s28 = scalar_lea.hbm %s2556_s6, 768  ;;  %s1697_s12 = scalar_lea.hbm %s2609_s4, 1536 }
 0x2b7   : > { %p1694_p9 = scmp.ne.s32.totalorder %s2556_s6, %s1693_s28  ;;  %p1698_p7 = scmp.lt.u32.totalorder %s2556_s6, %s2609_s4 }
 0x2b8   : > { %p1699_p3 = scmp.lt.u32.totalorder %s1697_s12, %s1693_s28  ;;  %p1701_p11 = scmp.lt.u32.totalorder %s1693_s28, %s2556_s6 }
 0x2b9   : > { %p1695_p1 = pnand %p1694_p9, %p1907_p10 }
 0x2ba   : > { %p1700_p4 = por %p1699_p3, %p1698_p7 }
 0x2bb   : > { %p1696_p2 = pneg %p1695_p1 }
 0x2bc   : > { %p1702_p6 = por %p1701_p11, %p1700_p4 }
 0x2be   : > { %p1703_p8 = pnand %p1702_p6, %p1696_p2 }
 0x2c0   : > { %1706 = shalt.err (!%p1703_p8)
}
 0x2c1   : > { %1532 = dma.vmem_to_hbm [thread:$0]  (%p1907_p10), %s2558_s30, 768, %s2556_s6, %s1367_s18  }
 0x2c2 PF: > { %s1395_s22 = sand.u32 1, %s1745_s15   ;;  %p2626_p12 = scmp.ne.s32.totalorder %s2617_s26, 0 }
 0x2c3   : > { %p2627_p13 = scmp.ge.s32.totalorder %s1765_s20, 2  ;;  %s1396_s11 = scalar_lea.sflag [#allocation6], %s1395_s22 }
 0x2c5   : > { %p1543_p0 = pnand %p2627_p13, %p2626_p12 }
 0x2c7   : > { %1740 = dma.done.wait (!%p1543_p0), %s1396_s11, 768  }
 0x2c8   : > { %1742 = vsyncadd (!%p1543_p0), %s1396_s11, 4294966528  ;;  %s21_s20 = sadd.s32 1, %s1765_s20   ;;  %s2628_s15 = smov %s1749_s16 }
 0x2c9   : > { %p18_p5 = scmp.ge.s32.totalorder %s21_s20, 4   ;;  %s2629_s16 = smov %s1753_s17 }
 0x2ca   : > { %s2630_s17 = smov %s1916_s10  ;;  %s2631_s18 = smov %s1761_s19 }
 0x2cb   : > { %s2632_s19 = smov %s2634_s5  ;;  %20 = sbr.rel (!%p18_p5) target bundleno = 7 (0x7), region = 92 }
 0x2d2   :  { %1401 = vsyncpa [#allocation5], 1 }
 0x2d3   :  { %1403 = vsyncpa [#allocation5 + $0x1], 1 }
 0x2d4   :  { %1404 = vsyncpa [#allocation8], 1 }
 0x2d5   :  { %1405 = vsyncpa [#allocation6], 1 }
 0x2d6   :  { %1407 = vsyncpa [#allocation6 + $0x1], 1 }

</bundles_post_ra>
